<compile_context>
chip_gen: v7x
topology: tpu7x:2x2x1
jax: 0.10.0
libtpu: 0.0.40
codegen_flags: <defaults>
</compile_context>

<pallas_src>
import functools
import math

import jax
import jax.numpy as jnp
from jax.experimental import pallas as pl
from jax.experimental.pallas import tpu as pltpu


# ----------------------------------------------------------------------------
# Rotary tables (TimeMoeRotaryEmbedding), built in plain JAX "glue".
# ----------------------------------------------------------------------------
def _rotary_cos_sin(head_dim: int, seq_len: int, base: float = 10000.0):
    inv_freq = 1.0 / (base ** (jnp.arange(0, head_dim, 2, dtype=jnp.float32) / head_dim))
    t = jnp.arange(seq_len, dtype=jnp.float32)
    freqs = jnp.outer(t, inv_freq)                    # (S, D/2)
    emb = jnp.concatenate([freqs, freqs], axis=-1)    # (S, D)
    return jnp.cos(emb), jnp.sin(emb)


def _rope_tables_full(head_dim: int, seq_len: int, hidden: int):
    """Full-width (S, hidden) RoPE tables.

    rotate_half(t) * sin is realised inside the kernel as
        shift_left(t, half) * sin_lo + shift_right(t, half) * sin_hi
    where sin_lo is -sin on the first half of each head (0 elsewhere) and sin_hi
    is +sin on the second half (0 elsewhere).  The zeros mask out the cross-head
    wrap-around of the full-width shifts, so this is exact.
    """
    cos, sin = _rotary_cos_sin(head_dim, seq_len)
    half = head_dim // 2
    z = jnp.zeros_like(sin[:, :half])
    sin_lo = jnp.concatenate([-sin[:, :half], z], axis=-1)   # (S, D)
    sin_hi = jnp.concatenate([z, sin[:, half:]], axis=-1)    # (S, D)
    reps = hidden // head_dim
    tile = lambda a: jnp.tile(a, (1, reps))                  # repeat per head -> (S, H)
    return tile(cos), tile(sin_lo), tile(sin_hi)


# ----------------------------------------------------------------------------
# Kernel 1: fused QKV projection + RoPE -> head-major (B, nH, S, D) q, k, v
# ----------------------------------------------------------------------------
def _qkv_rope_kernel(x_ref, wqkv_ref, bqkv_ref, cos_ref, slo_ref, shi_ref,
                     q_ref, k_ref, v_ref, *, num_heads, head_dim, hidden):
    x = x_ref[0]                                                        # (TS, H) bf16
    # One MXU pass over x for all three projections (bf16 operands, f32 acc).
    qkv = jnp.dot(x, wqkv_ref[...], preferred_element_type=jnp.float32)
    qkv = qkv + bqkv_ref[...]                                           # (TS, 3H) f32
    q = qkv[:, :hidden]
    k = qkv[:, hidden:2 * hidden]
    v = qkv[:, 2 * hidden:]

    cos = cos_ref[...].astype(jnp.float32)
    slo = slo_ref[...].astype(jnp.float32)
    shi = shi_ref[...].astype(jnp.float32)
    half = head_dim // 2

    def rope(t):                                                        # t: (TS, H) f32
        # Static lane slices + concat = portable full-width rotations by `half`.
        t_plus = jnp.concatenate([t[:, half:], t[:, :half]], axis=-1)            # t[j+half]
        t_minus = jnp.concatenate([t[:, hidden - half:], t[:, :hidden - half]],
                                  axis=-1)                                        # t[j-half]
        return t * cos + t_plus * slo + t_minus * shi

    q = rope(q)
    k = rope(k)

    # Head-major stores (static lane slices; lane-dense when head_dim % 128 == 0).
    for h in range(num_heads):
        lo = h * head_dim
        hi = lo + head_dim
        q_ref[0, h] = q[:, lo:hi].astype(q_ref.dtype)
        k_ref[0, h] = k[:, lo:hi].astype(k_ref.dtype)
        v_ref[0, h] = v[:, lo:hi].astype(v_ref.dtype)


# ----------------------------------------------------------------------------
# Kernel 2: flash attention (online softmax over kv tiles) + fused o_proj
# grid = (batch, q_tile, head, kv_tile)
# ----------------------------------------------------------------------------
def _flash_attn_oproj_kernel(q_ref, k_ref, v_ref, wo_ref, o_ref,
                             m_scr, l_scr, acc_scr, oacc_scr, *, scale):
    h = pl.program_id(2)
    ki = pl.program_id(3)
    nh = pl.num_programs(2)
    nk = pl.num_programs(3)

    @pl.when(jnp.logical_and(h == 0, ki == 0))
    def _():
        oacc_scr[...] = jnp.zeros(oacc_scr.shape, jnp.float32)

    @pl.when(ki == 0)
    def _():
        m_scr[...] = jnp.full(m_scr.shape, -jnp.inf, jnp.float32)
        l_scr[...] = jnp.zeros(l_scr.shape, jnp.float32)
        acc_scr[...] = jnp.zeros(acc_scr.shape, jnp.float32)

    q = q_ref[0, h]                                                     # (TQ, D) bf16, resident over heads
    k = k_ref[0, 0]                                                     # (TK, D) bf16
    v = v_ref[0, 0]                                                     # (TK, D) bf16

    # q @ k^T without an explicit transpose (contract the last dims directly).
    s = jax.lax.dot_general(q, k, (((1,), (1,)), ((), ())),
                            preferred_element_type=jnp.float32) * scale  # (TQ, TK) f32

    m_prev = m_scr[...]                                                 # (TQ, 1)
    m_new = jnp.maximum(m_prev, jnp.max(s, axis=-1, keepdims=True))
    alpha = jnp.exp(m_prev - m_new)                                     # f32 softmax path
    p = jnp.exp(s - m_new)
    l_scr[...] = alpha * l_scr[...] + jnp.sum(p, axis=-1, keepdims=True)
    acc_scr[...] = alpha * acc_scr[...] + jnp.dot(
        p.astype(v.dtype), v, preferred_element_type=jnp.float32)       # (TQ, D)
    m_scr[...] = m_new

    @pl.when(ki == nk - 1)
    def _():
        # Finalize this head and fold its output projection into the (TQ, H) slab.
        attn_h = (acc_scr[...] / l_scr[...]).astype(wo_ref.dtype)       # exact normalize
        oacc_scr[...] += jnp.dot(attn_h, wo_ref[h],
                                 preferred_element_type=jnp.float32)

    @pl.when(jnp.logical_and(h == nh - 1, ki == nk - 1))
    def _():
        o_ref[0] = oacc_scr[...].astype(o_ref.dtype)


# ----------------------------------------------------------------------------
# Wrapper
# ----------------------------------------------------------------------------
def _pick_tile(n, candidates=(512, 256, 128)):
    for c in candidates:
        if n % c == 0:
            return c
    return n  # fall back to the whole axis (block == full dim is always legal)


def _resident_spec(block_shape, index_map):
    """Grid-invariant block: fetched once; single-buffered when supported."""
    try:
        return pl.BlockSpec(block_shape, index_map,
                            pipeline_mode=pl.Buffered(buffer_count=1))
    except TypeError:  # older jax without pipeline_mode: default double buffer
        return pl.BlockSpec(block_shape, index_map)


def timer_attention_forward(x, params, num_heads, *,
                            seq_tile=None, q_tile=None, kv_tile=None,
                            compute_dtype=jnp.bfloat16,
                            vmem_limit_bytes=64 * 1024 * 1024):
    """x: (bsz, q_len, hidden). Returns (bsz, q_len, hidden) in x.dtype."""
    bsz, q_len, hidden = x.shape
    assert hidden % num_heads == 0
    head_dim = hidden // num_heads
    assert head_dim % 2 == 0
    out_dtype = x.dtype
    scale = 1.0 / math.sqrt(head_dim)

    ts = seq_tile or _pick_tile(q_len)
    tq = q_tile or _pick_tile(q_len)
    tkv = kv_tile or _pick_tile(q_len)
    assert q_len % ts == 0 and q_len % tq == 0 and q_len % tkv == 0

    csz = jnp.dtype(compute_dtype).itemsize

    # MXU operands in compute_dtype (bf16 by default); accumulation stays f32.
    wqkv = jnp.concatenate([params["wq"], params["wk"], params["wv"]],
                           axis=1).astype(compute_dtype)                 # (H, 3H)
    bqkv = jnp.concatenate([params["bq"], params["bk"], params["bv"]],
                           axis=1).astype(jnp.float32)                   # (1, 3H)
    wo3 = params["wo"].reshape(num_heads, head_dim, hidden).astype(compute_dtype)

    cos_f, sin_lo, sin_hi = _rope_tables_full(head_dim, q_len, hidden)   # (S, H)
    cos_f = cos_f.astype(compute_dtype)
    sin_lo = sin_lo.astype(compute_dtype)
    sin_hi = sin_hi.astype(compute_dtype)

    x_c = x.astype(compute_dtype)

    # ---------------- Kernel 1: QKV + RoPE ----------------
    qkv_shape = jax.ShapeDtypeStruct((bsz, num_heads, q_len, head_dim), compute_dtype)
    proj_kernel = functools.partial(_qkv_rope_kernel, num_heads=num_heads,
                                    head_dim=head_dim, hidden=hidden)
    k1_cost = pl.CostEstimate(
        flops=2 * bsz * q_len * hidden * 3 * hidden,
        transcendentals=0,
        bytes_accessed=int(4 * bsz * q_len * hidden * csz      # x in + q/k/v out
                           + 3 * hidden * hidden * csz          # wqkv
                           + 3 * q_len * hidden * csz),         # rope tables
    )
    q_hm, k_hm, v_hm = pl.pallas_call(
        proj_kernel,
        out_shape=(qkv_shape, qkv_shape, qkv_shape),
        grid=(bsz, q_len // ts),
        in_specs=[
            pl.BlockSpec((1, ts, hidden), lambda b, s: (b, s, 0)),           # x
            _resident_spec((hidden, 3 * hidden), lambda b, s: (0, 0)),       # wqkv (resident)
            _resident_spec((1, 3 * hidden), lambda b, s: (0, 0)),            # bqkv (resident)
            pl.BlockSpec((ts, hidden), lambda b, s: (s, 0)),                 # cos
            pl.BlockSpec((ts, hidden), lambda b, s: (s, 0)),                 # sin_lo
            pl.BlockSpec((ts, hidden), lambda b, s: (s, 0)),                 # sin_hi
        ],
        out_specs=[
            pl.BlockSpec((1, num_heads, ts, head_dim), lambda b, s: (b, 0, s, 0)),
            pl.BlockSpec((1, num_heads, ts, head_dim), lambda b, s: (b, 0, s, 0)),
            pl.BlockSpec((1, num_heads, ts, head_dim), lambda b, s: (b, 0, s, 0)),
        ],
        compiler_params=pltpu.CompilerParams(
            dimension_semantics=("parallel", "parallel"),
            vmem_limit_bytes=vmem_limit_bytes),
        cost_estimate=k1_cost,
    )(x_c, wqkv, bqkv, cos_f, sin_lo, sin_hi)

    # ---------------- Kernel 2: flash attention + o_proj ----------------
    attn_kernel = functools.partial(_flash_attn_oproj_kernel, scale=scale)
    k2_cost = pl.CostEstimate(
        flops=4 * bsz * q_len * q_len * hidden + 2 * bsz * q_len * hidden * hidden,
        transcendentals=bsz * num_heads * q_len * q_len,
        bytes_accessed=int(bsz * q_len * hidden * csz                          # q (once)
                           + 2 * bsz * q_len * hidden * (q_len // tq) * csz    # k, v per q tile
                           + hidden * hidden * csz                             # wo (once)
                           + bsz * q_len * hidden * jnp.dtype(out_dtype).itemsize),
    )
    out = pl.pallas_call(
        attn_kernel,
        out_shape=jax.ShapeDtypeStruct((bsz, q_len, hidden), out_dtype),
        grid=(bsz, q_len // tq, num_heads, q_len // tkv),
        in_specs=[
            # Q tile carries all heads and is resident across the head axis.
            pl.BlockSpec((1, num_heads, tq, head_dim),
                         lambda b, qi, h, ki: (b, 0, qi, 0)),
            pl.BlockSpec((1, 1, tkv, head_dim), lambda b, qi, h, ki: (b, h, ki, 0)),
            pl.BlockSpec((1, 1, tkv, head_dim), lambda b, qi, h, ki: (b, h, ki, 0)),
            # Wo fully resident (single buffer), indexed by head in the epilogue.
            _resident_spec((num_heads, head_dim, hidden),
                           lambda b, qi, h, ki: (0, 0, 0)),
        ],
        out_specs=pl.BlockSpec((1, tq, hidden), lambda b, qi, h, ki: (b, qi, 0)),
        scratch_shapes=[
            pltpu.VMEM((tq, 1), jnp.float32),         # m (running max)
            pltpu.VMEM((tq, 1), jnp.float32),         # l (running sum)
            pltpu.VMEM((tq, head_dim), jnp.float32),  # per-head accumulator
            pltpu.VMEM((tq, hidden), jnp.float32),    # o_proj accumulator slab
        ],
        compiler_params=pltpu.CompilerParams(
            dimension_semantics=("parallel", "parallel", "arbitrary", "arbitrary"),
            vmem_limit_bytes=vmem_limit_bytes),
        cost_estimate=k2_cost,
    )(q_hm, k_hm, v_hm, wo3)
    return out


# ----------------------------------------------------------------------------
# Pure-JAX reference (matches the PyTorch module semantics, f32 throughout)
# ----------------------------------------------------------------------------
def timer_attention_ref(x, params, num_heads):
    bsz, S, H = x.shape
    D = H // num_heads
    cos, sin = _rotary_cos_sin(D, S)                   # (S, D)

    q = x @ params["wq"] + params["bq"][0]
    k = x @ params["wk"] + params["bk"][0]
    v = x @ params["wv"] + params["bv"][0]

    def split_heads(t):                                # (B, S, H) -> (B, nH, S, D)
        return t.reshape(bsz, S, num_heads, D).transpose(0, 2, 1, 3)

    q, k, v = split_heads(q), split_heads(k), split_heads(v)

    def rot_half(t):
        return jnp.concatenate([-t[..., D // 2:], t[..., :D // 2]], axis=-1)

    c = cos[None, None]
    s = sin[None, None]
    q = q * c + rot_half(q) * s
    k = k * c + rot_half(k) * s

    scores = jnp.einsum("bhqd,bhkd->bhqk", q, k) / math.sqrt(D)
    p = jax.nn.softmax(scores, axis=-1)
    o = jnp.einsum("bhqk,bhkd->bhqd", p, v)
    o = o.transpose(0, 2, 1, 3).reshape(bsz, S, H)
    return o @ params["wo"]


# ----------------------------------------------------------------------------
# Main
# ----------------------------------------------------------------------------
if __name__ == "__main__":
    # Small but layout-realistic shapes: head_dim = 128 (lane-dense head-major
    # stores, matching the real model), multiple q/kv tiles and multiple heads
    # so the online-softmax and o_proj accumulation paths are exercised.
    bsz, q_len, hidden, num_heads = 2, 256, 256, 2

    key = jax.random.PRNGKey(0)
    keys = jax.random.split(key, 8)
    init = lambda k, shape: 0.05 * jax.random.normal(k, shape, dtype=jnp.float32)

    # Weights stored as (in_features, out_features) = W_pytorch.T
    params = {
        "wq": init(keys[0], (hidden, hidden)),
        "bq": init(keys[1], (1, hidden)),
        "wk": init(keys[2], (hidden, hidden)),
        "bk": init(keys[3], (1, hidden)),
        "wv": init(keys[4], (hidden, hidden)),
        "bv": init(keys[5], (1, hidden)),
        "wo": init(keys[6], (hidden, hidden)),
    }
    x = jax.random.normal(keys[7], (bsz, q_len, hidden), dtype=jnp.float32)

    out = timer_attention_forward(x, params, num_heads,
                                  seq_tile=128, q_tile=128, kv_tile=128)
    out = jax.block_until_ready(out)

    ref = timer_attention_ref(x, params, num_heads)
    assert out.shape == (bsz, q_len, hidden)
    max_err = float(jnp.max(jnp.abs(out - ref)))
    # bf16 MXU operands with f32 accumulation -> allow bf16-level tolerance
    # against the all-f32 reference.
    assert jnp.allclose(out, ref, atol=2e-2, rtol=2e-2), \
        f"mismatch vs reference (max abs err {max_err})"

    print("KERNEL_OK")
</pallas_src>

<mosaic_0001>
module attributes {stable_mosaic.version = 11 : i64} {
  func.func @_qkv_rope_kernel(%arg0: i32, %arg1: i32, %arg2: memref<1x128x256xbf16, #tpu.memory_space<vmem>>, %arg3: memref<256x768xbf16, #tpu.memory_space<vmem>>, %arg4: memref<1x768xf32, #tpu.memory_space<vmem>>, %arg5: memref<128x256xbf16, #tpu.memory_space<vmem>>, %arg6: memref<128x256xbf16, #tpu.memory_space<vmem>>, %arg7: memref<128x256xbf16, #tpu.memory_space<vmem>>, %arg8: memref<1x2x128x128xbf16, #tpu.memory_space<vmem>>, %arg9: memref<1x2x128x128xbf16, #tpu.memory_space<vmem>>, %arg10: memref<1x2x128x128xbf16, #tpu.memory_space<vmem>>) attributes {dimension_semantics = [#tpu.dimension_semantics<parallel>, #tpu.dimension_semantics<parallel>], iteration_bounds = array<i64: 2, 2>, scalar_prefetch = 0 : i64, scratch_operands = 0 : i64, tpu.core_type = #tpu.core_type<tc>, window_params = [{transform_indices = @transform_0, window_bounds = array<i64: 1, 128, 256>}, {pipeline_mode = #tpu.pipeline_mode<synchronous>, transform_indices = @transform_1, window_bounds = array<i64: 256, 768>}, {pipeline_mode = #tpu.pipeline_mode<synchronous>, transform_indices = @transform_2, window_bounds = array<i64: 1, 768>}, {transform_indices = @transform_3, window_bounds = array<i64: 128, 256>}, {transform_indices = @transform_4, window_bounds = array<i64: 128, 256>}, {transform_indices = @transform_5, window_bounds = array<i64: 128, 256>}, {transform_indices = @transform_6, window_bounds = array<i64: 1, 2, 128, 128>}, {transform_indices = @transform_7, window_bounds = array<i64: 1, 2, 128, 128>}, {transform_indices = @transform_8, window_bounds = array<i64: 1, 2, 128, 128>}]} {
    %c0 = arith.constant 0 : index
    %c0_0 = arith.constant 0 : index
    %c0_1 = arith.constant 0 : index
    %0 = vector.load %arg2[%c0, %c0_0, %c0_1] : memref<1x128x256xbf16, #tpu.memory_space<vmem>>, vector<1x128x256xbf16>
    %1 = vector.shape_cast %0 : vector<1x128x256xbf16> to vector<128x256xbf16>
    %c0_2 = arith.constant 0 : index
    %c0_3 = arith.constant 0 : index
    %2 = vector.load %arg3[%c0_2, %c0_3] : memref<256x768xbf16, #tpu.memory_space<vmem>>, vector<256x768xbf16>
    %cst = arith.constant dense<0.000000e+00> : vector<128x768xf32>
    %3 = tpu.matmul %1, %2, %cst {dimension_numbers = #tpu.dot_dimension_numbers<[1], [0], [0], [1], [0, 0, 1, 1], [], []>} : vector<128x256xbf16>, vector<256x768xbf16>, vector<128x768xf32> -> vector<128x768xf32>
    %c0_4 = arith.constant 0 : index
    %c0_5 = arith.constant 0 : index
    %4 = vector.load %arg4[%c0_4, %c0_5] : memref<1x768xf32, #tpu.memory_space<vmem>>, vector<1x768xf32>
    %5 = vector.broadcast %4 : vector<1x768xf32> to vector<128x768xf32>
    %6 = arith.addf %3, %5 : vector<128x768xf32>
    %7 = vector.extract_strided_slice %6 {offsets = [0, 0], sizes = [128, 256], strides = [1, 1]} : vector<128x768xf32> to vector<128x256xf32>
    %8 = vector.extract_strided_slice %6 {offsets = [0, 256], sizes = [128, 256], strides = [1, 1]} : vector<128x768xf32> to vector<128x256xf32>
    %9 = vector.extract_strided_slice %6 {offsets = [0, 512], sizes = [128, 256], strides = [1, 1]} : vector<128x768xf32> to vector<128x256xf32>
    %c0_6 = arith.constant 0 : index
    %c0_7 = arith.constant 0 : index
    %10 = vector.load %arg5[%c0_6, %c0_7] : memref<128x256xbf16, #tpu.memory_space<vmem>>, vector<128x256xbf16>
    %11 = arith.extf %10 : vector<128x256xbf16> to vector<128x256xf32>
    %c0_8 = arith.constant 0 : index
    %c0_9 = arith.constant 0 : index
    %12 = vector.load %arg6[%c0_8, %c0_9] : memref<128x256xbf16, #tpu.memory_space<vmem>>, vector<128x256xbf16>
    %13 = arith.extf %12 : vector<128x256xbf16> to vector<128x256xf32>
    %c0_10 = arith.constant 0 : index
    %c0_11 = arith.constant 0 : index
    %14 = vector.load %arg7[%c0_10, %c0_11] : memref<128x256xbf16, #tpu.memory_space<vmem>>, vector<128x256xbf16>
    %15 = arith.extf %14 : vector<128x256xbf16> to vector<128x256xf32>
    %16 = vector.extract_strided_slice %7 {offsets = [0, 64], sizes = [128, 192], strides = [1, 1]} : vector<128x256xf32> to vector<128x192xf32>
    %17 = vector.extract_strided_slice %7 {offsets = [0, 0], sizes = [128, 64], strides = [1, 1]} : vector<128x256xf32> to vector<128x64xf32>
    %18 = tpu.concatenate %16, %17 in 1 : vector<128x192xf32>, vector<128x64xf32> -> vector<128x256xf32>
    %19 = vector.extract_strided_slice %7 {offsets = [0, 192], sizes = [128, 64], strides = [1, 1]} : vector<128x256xf32> to vector<128x64xf32>
    %20 = vector.extract_strided_slice %7 {offsets = [0, 0], sizes = [128, 192], strides = [1, 1]} : vector<128x256xf32> to vector<128x192xf32>
    %21 = tpu.concatenate %19, %20 in 1 : vector<128x64xf32>, vector<128x192xf32> -> vector<128x256xf32>
    %22 = arith.mulf %7, %11 : vector<128x256xf32>
    %23 = arith.mulf %18, %13 : vector<128x256xf32>
    %24 = arith.addf %22, %23 : vector<128x256xf32>
    %25 = arith.mulf %21, %15 : vector<128x256xf32>
    %26 = arith.addf %24, %25 : vector<128x256xf32>
    %27 = vector.extract_strided_slice %8 {offsets = [0, 64], sizes = [128, 192], strides = [1, 1]} : vector<128x256xf32> to vector<128x192xf32>
    %28 = vector.extract_strided_slice %8 {offsets = [0, 0], sizes = [128, 64], strides = [1, 1]} : vector<128x256xf32> to vector<128x64xf32>
    %29 = tpu.concatenate %27, %28 in 1 : vector<128x192xf32>, vector<128x64xf32> -> vector<128x256xf32>
    %30 = vector.extract_strided_slice %8 {offsets = [0, 192], sizes = [128, 64], strides = [1, 1]} : vector<128x256xf32> to vector<128x64xf32>
    %31 = vector.extract_strided_slice %8 {offsets = [0, 0], sizes = [128, 192], strides = [1, 1]} : vector<128x256xf32> to vector<128x192xf32>
    %32 = tpu.concatenate %30, %31 in 1 : vector<128x64xf32>, vector<128x192xf32> -> vector<128x256xf32>
    %33 = arith.mulf %8, %11 : vector<128x256xf32>
    %34 = arith.mulf %29, %13 : vector<128x256xf32>
    %35 = arith.addf %33, %34 : vector<128x256xf32>
    %36 = arith.mulf %32, %15 : vector<128x256xf32>
    %37 = arith.addf %35, %36 : vector<128x256xf32>
    %38 = vector.extract_strided_slice %26 {offsets = [0, 0], sizes = [128, 128], strides = [1, 1]} : vector<128x256xf32> to vector<128x128xf32>
    %39 = arith.truncf %38 : vector<128x128xf32> to vector<128x128xbf16>
    %c0_12 = arith.constant 0 : index
    %c0_13 = arith.constant 0 : index
    %c0_14 = arith.constant 0 : index
    %c0_15 = arith.constant 0 : index
    %40 = vector.load %arg8[%c0_12, %c0_13, %c0_14, %c0_15] : memref<1x2x128x128xbf16, #tpu.memory_space<vmem>>, vector<1x1x128x128xbf16>
    %41 = vector.shape_cast %40 : vector<1x1x128x128xbf16> to vector<128x128xbf16>
    %42 = vector.shape_cast %39 : vector<128x128xbf16> to vector<1x1x128x128xbf16>
    tpu.vector_store %arg8[%c0_12, %c0_13, %c0_14, %c0_15], %42 {strides = array<i32>} : memref<1x2x128x128xbf16, #tpu.memory_space<vmem>>, vector<1x1x128x128xbf16>,
    %43 = vector.extract_strided_slice %37 {offsets = [0, 0], sizes = [128, 128], strides = [1, 1]} : vector<128x256xf32> to vector<128x128xf32>
    %44 = arith.truncf %43 : vector<128x128xf32> to vector<128x128xbf16>
    %c0_16 = arith.constant 0 : index
    %c0_17 = arith.constant 0 : index
    %c0_18 = arith.constant 0 : index
    %c0_19 = arith.constant 0 : index
    %45 = vector.load %arg9[%c0_16, %c0_17, %c0_18, %c0_19] : memref<1x2x128x128xbf16, #tpu.memory_space<vmem>>, vector<1x1x128x128xbf16>
    %46 = vector.shape_cast %45 : vector<1x1x128x128xbf16> to vector<128x128xbf16>
    %47 = vector.shape_cast %44 : vector<128x128xbf16> to vector<1x1x128x128xbf16>
    tpu.vector_store %arg9[%c0_16, %c0_17, %c0_18, %c0_19], %47 {strides = array<i32>} : memref<1x2x128x128xbf16, #tpu.memory_space<vmem>>, vector<1x1x128x128xbf16>,
    %48 = vector.extract_strided_slice %9 {offsets = [0, 0], sizes = [128, 128], strides = [1, 1]} : vector<128x256xf32> to vector<128x128xf32>
    %49 = arith.truncf %48 : vector<128x128xf32> to vector<128x128xbf16>
    %c0_20 = arith.constant 0 : index
    %c0_21 = arith.constant 0 : index
    %c0_22 = arith.constant 0 : index
    %c0_23 = arith.constant 0 : index
    %50 = vector.load %arg10[%c0_20, %c0_21, %c0_22, %c0_23] : memref<1x2x128x128xbf16, #tpu.memory_space<vmem>>, vector<1x1x128x128xbf16>
    %51 = vector.shape_cast %50 : vector<1x1x128x128xbf16> to vector<128x128xbf16>
    %52 = vector.shape_cast %49 : vector<128x128xbf16> to vector<1x1x128x128xbf16>
    tpu.vector_store %arg10[%c0_20, %c0_21, %c0_22, %c0_23], %52 {strides = array<i32>} : memref<1x2x128x128xbf16, #tpu.memory_space<vmem>>, vector<1x1x128x128xbf16>,
    %53 = vector.extract_strided_slice %26 {offsets = [0, 128], sizes = [128, 128], strides = [1, 1]} : vector<128x256xf32> to vector<128x128xf32>
    %54 = arith.truncf %53 : vector<128x128xf32> to vector<128x128xbf16>
    %c0_24 = arith.constant 0 : index
    %c1 = arith.constant 1 : index
    %c0_25 = arith.constant 0 : index
    %c0_26 = arith.constant 0 : index
    %55 = vector.load %arg8[%c0_24, %c1, %c0_25, %c0_26] : memref<1x2x128x128xbf16, #tpu.memory_space<vmem>>, vector<1x1x128x128xbf16>
    %56 = vector.shape_cast %55 : vector<1x1x128x128xbf16> to vector<128x128xbf16>
    %57 = vector.shape_cast %54 : vector<128x128xbf16> to vector<1x1x128x128xbf16>
    tpu.vector_store %arg8[%c0_24, %c1, %c0_25, %c0_26], %57 {strides = array<i32>} : memref<1x2x128x128xbf16, #tpu.memory_space<vmem>>, vector<1x1x128x128xbf16>,
    %58 = vector.extract_strided_slice %37 {offsets = [0, 128], sizes = [128, 128], strides = [1, 1]} : vector<128x256xf32> to vector<128x128xf32>
    %59 = arith.truncf %58 : vector<128x128xf32> to vector<128x128xbf16>
    %c0_27 = arith.constant 0 : index
    %c1_28 = arith.constant 1 : index
    %c0_29 = arith.constant 0 : index
    %c0_30 = arith.constant 0 : index
    %60 = vector.load %arg9[%c0_27, %c1_28, %c0_29, %c0_30] : memref<1x2x128x128xbf16, #tpu.memory_space<vmem>>, vector<1x1x128x128xbf16>
    %61 = vector.shape_cast %60 : vector<1x1x128x128xbf16> to vector<128x128xbf16>
    %62 = vector.shape_cast %59 : vector<128x128xbf16> to vector<1x1x128x128xbf16>
    tpu.vector_store %arg9[%c0_27, %c1_28, %c0_29, %c0_30], %62 {strides = array<i32>} : memref<1x2x128x128xbf16, #tpu.memory_space<vmem>>, vector<1x1x128x128xbf16>,
    %63 = vector.extract_strided_slice %9 {offsets = [0, 128], sizes = [128, 128], strides = [1, 1]} : vector<128x256xf32> to vector<128x128xf32>
    %64 = arith.truncf %63 : vector<128x128xf32> to vector<128x128xbf16>
    %c0_31 = arith.constant 0 : index
    %c1_32 = arith.constant 1 : index
    %c0_33 = arith.constant 0 : index
    %c0_34 = arith.constant 0 : index
    %65 = vector.load %arg10[%c0_31, %c1_32, %c0_33, %c0_34] : memref<1x2x128x128xbf16, #tpu.memory_space<vmem>>, vector<1x1x128x128xbf16>
    %66 = vector.shape_cast %65 : vector<1x1x128x128xbf16> to vector<128x128xbf16>
    %67 = vector.shape_cast %64 : vector<128x128xbf16> to vector<1x1x128x128xbf16>
    tpu.vector_store %arg10[%c0_31, %c1_32, %c0_33, %c0_34], %67 {strides = array<i32>} : memref<1x2x128x128xbf16, #tpu.memory_space<vmem>>, vector<1x1x128x128xbf16>,
    return
  }
  func.func @transform_0(%arg0: i32, %arg1: i32) -> (i32, i32, i32) {
    %c0_i32 = arith.constant 0 : i32
    %c0_i32_0 = arith.constant 0 : i32
    return %arg0, %arg1, %c0_i32 : i32, i32, i32
  }
  func.func @transform_1(%arg0: i32, %arg1: i32) -> (i32, i32) {
    %c0_i32 = arith.constant 0 : i32
    %c0_i32_0 = arith.constant 0 : i32
    %c0_i32_1 = arith.constant 0 : i32
    return %c0_i32, %c0_i32_0 : i32, i32
  }
  func.func @transform_2(%arg0: i32, %arg1: i32) -> (i32, i32) {
    %c0_i32 = arith.constant 0 : i32
    %c0_i32_0 = arith.constant 0 : i32
    %c0_i32_1 = arith.constant 0 : i32
    return %c0_i32, %c0_i32_0 : i32, i32
  }
  func.func @transform_3(%arg0: i32, %arg1: i32) -> (i32, i32) {
    %c0_i32 = arith.constant 0 : i32
    %c0_i32_0 = arith.constant 0 : i32
    return %arg1, %c0_i32 : i32, i32
  }
  func.func @transform_4(%arg0: i32, %arg1: i32) -> (i32, i32) {
    %c0_i32 = arith.constant 0 : i32
    %c0_i32_0 = arith.constant 0 : i32
    return %arg1, %c0_i32 : i32, i32
  }
  func.func @transform_5(%arg0: i32, %arg1: i32) -> (i32, i32) {
    %c0_i32 = arith.constant 0 : i32
    %c0_i32_0 = arith.constant 0 : i32
    return %arg1, %c0_i32 : i32, i32
  }
  func.func @transform_6(%arg0: i32, %arg1: i32) -> (i32, i32, i32, i32) {
    %c0_i32 = arith.constant 0 : i32
    %c0_i32_0 = arith.constant 0 : i32
    %c0_i32_1 = arith.constant 0 : i32
    return %arg0, %c0_i32, %arg1, %c0_i32_0 : i32, i32, i32, i32
  }
  func.func @transform_7(%arg0: i32, %arg1: i32) -> (i32, i32, i32, i32) {
    %c0_i32 = arith.constant 0 : i32
    %c0_i32_0 = arith.constant 0 : i32
    %c0_i32_1 = arith.constant 0 : i32
    return %arg0, %c0_i32, %arg1, %c0_i32_0 : i32, i32, i32, i32
  }
  func.func @transform_8(%arg0: i32, %arg1: i32) -> (i32, i32, i32, i32) {
    %c0_i32 = arith.constant 0 : i32
    %c0_i32_0 = arith.constant 0 : i32
    %c0_i32_1 = arith.constant 0 : i32
    return %arg0, %c0_i32, %arg1, %c0_i32_0 : i32, i32, i32, i32
  }
}

</mosaic_0001>

<bundles_post_ra>
// kernel: tpu_custom_call.1
= control target key start
LH: loop header
LB: loop body
LE: loop exit
PB: predicated region body
PF: predicated region fallthrough
CT: control target
= control target key end

     0   :  { %s6095_s0 = inlined_call_operand.hbm [shape: bf16[2,256,256], index: 0, kind: input, shape index: {}]   ;;  %s6096_s1 = inlined_call_operand.hbm [shape: bf16[256,768], index: 1, kind: input, shape index: {}]   ;;  %s6097_s2 = inlined_call_operand.hbm [shape: f32[1,768], index: 2, kind: input, shape index: {}]   ;;  %s6098_s3 = inlined_call_operand.hbm [shape: bf16[256,256], index: 3, kind: input, shape index: {}]   ;;  %s6099_s4 = inlined_call_operand.hbm [shape: bf16[256,256], index: 4, kind: input, shape index: {}]   ;;  %s6100_s5 = inlined_call_operand.hbm [shape: bf16[256,256], index: 5, kind: input, shape index: {}]   ;;  %s6101_s6 = inlined_call_operand.hbm [shape: bf16[2,2,256,128], index: 6, kind: output, shape index: {0}]   ;;  %s6102_s7 = inlined_call_operand.hbm [shape: bf16[2,2,256,128], index: 7, kind: output, shape index: {1}]   ;;  %s6103_s8 = inlined_call_operand.hbm [shape: bf16[2,2,256,128], index: 8, kind: output, shape index: {2}]  }
   0x1   :  { %6175 = sst [smem:[#allocation77_spill]] %s6096_s1 }
   0x2   :  { %6176 = sst [smem:[#allocation78_spill]] %s6097_s2 }
   0x3   :  { %6177 = sst [smem:[#allocation79_spill]] %s6098_s3 }
   0x4   :  { %6178 = sst [smem:[#allocation80_spill]] %s6101_s6 }
   0x5   :  { %6179 = sst [smem:[#allocation81_spill]] %s6102_s7 }
   0x6   :  { %6180 = sst [smem:[#allocation82_spill]] %s6103_s8 }
   0x7   :  { %14 = vsyncpa [#allocation3], 0 }
   0x8   :  { %16 = vsyncpa [#allocation3 + $0x1], 0 }
   0x9   :  { %17 = vsyncpa [#allocation6], 0 }
   0xa   :  { %18 = vsyncpa [#allocation9], 0 }
   0xb   :  { %20 = vsyncpa [#allocation9 + $0x1], 0 }
   0xc   :  { %21 = vsyncpa [#allocation12], 0 }
   0xd   :  { %23 = vsyncpa [#allocation12 + $0x1], 0 }
   0xe   :  { %24 = vsyncpa [#allocation4], 0 }
   0xf   :  { %26 = vsyncpa [#allocation4 + $0x1], 0 }
  0x10   :  { %27 = vsyncpa [#allocation15], 0 }
  0x11   :  { %29 = vsyncpa [#allocation15 + $0x1], 0  ;;  %s4701_s27 = smov 0   ;;  %s4703_s28 = smov 0  }
  0x12   :  { %s4705_s29 = smov 0   ;;  %s4707_s30 = smov 0  }
  0x13   :  { %s4709_s9 = smov 0   ;;  %s4711_s10 = smov 0  }
  0x14   :  { %s4713_s11 = smov 0   ;;  %s4715_s12 = smov 0  }
  0x15   :  { %s4717_s13 = smov 0   ;;  %s4719_s14 = smov 0  }
  0x16   :  { %s4721_s15 = smov 0  }
  0x17 LB: > { %6181 = sst [smem:[#allocation29_spill]] %s4586_s28  ;;  %s4755_s16 = sadd.s32 4294967295, %s4622_s15   ;;  %s4622_s15 = sphi %s4721_s15, %s35_s15   ;;  %s4618_s14 = sphi %s4719_s14, %s6339_s14   ;;  %s4614_s13 = sphi %s4717_s13, %s6338_s13   ;;  %s4610_s12 = sphi %s4715_s12, %s6337_s12   ;;  %s4606_s11 = sphi %s4713_s11, %s6336_s11   ;;  %s4602_s10 = sphi %s4711_s10, %s6335_s10   ;;  %s4598_s9 = sphi %s4709_s9, %s6334_s9   ;;  %s4594_s30 = sphi %s4707_s30, %s6330_s30   ;;  %s4590_s29 = sphi %s4705_s29, %s6333_s29   ;;  %s4586_s28 = sphi %s4703_s28, %s6332_s28   ;;  %s4582_s27 = sphi %s4701_s27, %s6328_s27  }
  0x18   : > { %6182 = sst [smem:[#allocation30_spill]] %s4594_s30  ;;  %s6104_s17 = sadd.s32 4294967294, %s4622_s15  }
  0x19   : > { %6183 = sst [smem:[#allocation31_spill]] %s4598_s9  ;;  %p69_p0 = scmp.ne.s32.totalorder %s4598_s9, %s4594_s30 }
  0x1a   : > { %6184 = sst [smem:[#allocation32_spill]] %s4606_s11  ;;  %p6107_p1 = scmp.eq.s32.totalorder %s4755_s16, 0 }
  0x1b   : > { %6185 = sst [smem:[#allocation33_spill]] %s4610_s12  ;;  %p137_p2 = scmp.ne.s32.totalorder %s4586_s28, %s4582_s27 }
  0x1c   : > { %6186 = sst [smem:[#allocation34_spill]] %s4755_s16  ;;  %p4765_p4 = por %p6107_p1, %p69_p0 }
  0x1d   : > { %p221_p5 = scmp.eq.s32.totalorder %s6104_s17, 3  ;;  %p4773_p6 = por %p137_p2, %p6107_p1 }
  0x1e   : > { %s6187_s18 = scalar_select %p4765_p4, 1, 0 }
  0x1f   : > { %s6189_s19 = scalar_select %p4773_p6, 1, 0 }
  0x20   : > { %6188 = sst [smem:[#allocation35_spill]] %s6187_s18  ;;  %p3255_p7 = scmp.ge.s32.totalorder %s4622_s15, 1 }
  0x21   : > { %6190 = sst [smem:[#allocation36_spill]] %s6189_s19  ;;  %p4778_p8 = por %p221_p5, %p69_p0 }
  0x22   : > { %p284_p9 = scmp.lt.s32.totalorder %s4622_s15, 5  ;;  %s4624_s22 = smov [#allocation5]  }
  0x23   : > { %s6191_s20 = scalar_select %p4778_p8, 1, 0 }
  0x24   : > { %p4783_p10 = pnand %p3255_p7, %p284_p9  ;;  %s296_s23 = sshll.u32 %s4624_s22, 4  ;;  %s297_s23 = int_to_ptr.vmem [resolvable:$true] %s296_s23 }
  0x25   : > { %6192 = sst [smem:[#allocation37_spill]] %s6191_s20  ;;  %s44_s25 = sadd.s32 1, %s4614_s13 }
  0x26   : > { %s6193_s21 = scalar_select %p4783_p10, 1, 0 }
  0x27   : > { %p4016_p11 = pneg %p4783_p10  ;;  %s6196_s1 = sld [smem:[#allocation77_spill]] }
  0x28   : > { %6194 = sst [smem:[#allocation38_spill]] %s6193_s21 }
  0x29   : > { %p4791_p12 = pnand %p4016_p11, %p6107_p1 }
  0x2b   : > { %s6195_s24 = scalar_select %p4791_p12, 1, 0 }
  0x2c   : > { %p6120_p0 = pneg %p4791_p12 }
  0x2d   : > { %s4336_s17 = scalar_lea.hbm %s6196_s1, 12288 }
  0x2e   : > { %p4337_p13 = scmp.ne.s32.totalorder %s6196_s1, %s4336_s17  ;;  %p4343_p7 = scmp.lt.u32.totalorder %s4336_s17, %s6196_s1 }
  0x30   : > { %p4339_p2 = pnand %p6120_p0, %p4337_p13 }
  0x32   : > { %p4340_p5 = pneg %p4339_p2 }
  0x34   : > { %p4345_p9 = pnand %p4343_p7, %p4340_p5 }
  0x36   : > { %4348 = shalt.err (!%p4345_p9)
}
  0x37   : > { %s4349_s7 = scalar_lea.vmem %s297_s23, 12288  ;;  %p4357_p8 = scmp.lt.s32.totalorder %s297_s23, %s297_s23 }
  0x38   : > { %p4350_p11 = scmp.ne.s32.totalorder %s297_s23, %s4349_s7  ;;  %p4358_p6 = scmp.lt.s32.totalorder %s4349_s7, %s4349_s7 }
  0x3a   : > { %p4352_p1 = pnand %p4350_p11, %p6120_p0  ;;  %p4359_p4 = por %p4358_p6, %p4357_p8 }
  0x3c   : > { %p4353_p3 = pneg %p4352_p1 }
  0x3e   : > { %p4360_p10 = pnand %p4359_p4, %p4353_p3 }
  0x40   : > { %4363 = shalt.err (!%p4360_p10)
}
  0x41   : > { %s4625_s30 = smov 384   ;;  %s4626_s8 = smov 24  }
  0x42   : > { %4019 = dma.hbm_to_vmem [thread:$0]  (!%p4791_p12), %s6196_s1, 12288, %s297_s23, [#allocation6], %s4625_s30, %s4625_s30, %s4626_s8  }
  0x43   : > { %p4818_p1 = scmp.ge.s32.totalorder %s44_s25, 2  ;;  %p6119_p3 = scmp.eq.s32.totalorder %s4622_s15, 0 }
  0x44   : > { %s124_s26 = sadd.s32 1, %s4590_s29  ;;  %p131_p4 = scmp.ne.s32.totalorder %s4590_s29, %s4586_s28 }
  0x45   : > { %s6197_s20 = scalar_select %p4818_p1, 1, 0 }
  0x46   : > { %s6341_s25 = smov (%p4818_p1, %s44_s25), 0  ;;  %p4832_p6 = por %p131_p4, %p6119_p3 }
  0x47   : > { %6198 = sst [smem:[#allocation39_spill]] %s6341_s25  ;;  %p6118_p8 = scmp.lt.s32.totalorder %s4622_s15, 4 }
  0x48   : > { %s4839_s23 = ssub.s32 %s4614_s13, %s6341_s25  ;;  %s345_s22 = sand.u32 1, %s4622_s15  }
  0x49   : > { %p122_p10 = scmp.eq.s32.totalorder %s4839_s23, 0  ;;  %s6112_s30 = sand.u32 1, %s4590_s29  }
  0x4a   : > { %s4849_s7 = sshll.u32 %s6112_s30, 7  ;;  %s4852_s17 = sshll.u32 %s4614_s13, 11 }
  0x4b   : > { %s4845_s8 = scalar_select %p122_p10, %s4590_s29, %s124_s26  }
  0x4c   : > { %s6201_s3 = sld [smem:[#allocation79_spill]]  ;;  %s349_s25 = scalar_lea.vmem [#allocation8], %s4849_s7 }
  0x4d   : > { %6200 = sst [smem:[#allocation40_spill]] %s4845_s8  ;;  %s357_s11 = sshll.u32 %s349_s25, 4  ;;  %s4861_s11 = int_to_ptr.vmem [resolvable:$true] %s357_s11 }
  0x4e   : > { %p4867_p13 = pnand %p6118_p8, %p4832_p6  ;;  %s4627_s30 = smov [#allocation7]  }
  0x4f   : > { %s4871_s8 = sshll.u32 %s4627_s30, 4  ;;  %s4873_s1 = scalar_lea.sflag [#allocation9], %s345_s22  ;;  %s311_s8 = int_to_ptr.vmem [resolvable:$true] %s4871_s8 }
  0x50   : > { %s6202_s26 = scalar_select %p4867_p13, 1, 0 }
  0x51   : > { %p4879_p5 = pneg %p4867_p13 }
  0x52   : > { %s4858_s12 = scalar_lea.hbm %s6201_s3, %s4852_s17  ;;  %s4369_s28 = scalar_lea.hbm %s6201_s3, 4096 }
  0x53   : > { %s4364_s6 = scalar_lea.hbm %s4858_s12, 2048  ;;  %p4370_p11 = scmp.lt.u32.totalorder %s4858_s12, %s6201_s3 }
  0x54   : > { %p4365_p2 = scmp.ne.s32.totalorder %s4858_s12, %s4364_s6  ;;  %p4371_p4 = scmp.lt.u32.totalorder %s4369_s28, %s4364_s6 }
  0x55   : > { %s6203_s19 = scalar_select %p4879_p5, 1, 0 }
  0x56   : > { %p4367_p7 = pnand %p4879_p5, %p4365_p2  ;;  %p4372_p6 = por %p4371_p4, %p4370_p11 }
  0x57   : > { %p4373_p10 = scmp.lt.u32.totalorder %s4364_s6, %s4858_s12 }
  0x58   : > { %p4368_p9 = pneg %p4367_p7 }
  0x59   : > { %p4374_p8 = por %p4373_p10, %p4372_p6 }
  0x5b   : > { %p4375_p3 = pnand %p4374_p8, %p4368_p9 }
  0x5d   : > { %4378 = shalt.err (!%p4375_p3)
}
  0x5e   : > { %s4379_s22 = scalar_lea.vmem %s4861_s11, 2048  ;;  %s4628_s25 = smov [#allocation8]  }
  0x5f   : > { %p4380_p2 = scmp.ne.s32.totalorder %s4861_s11, %s4379_s22  ;;  %s4384_s27 = sshll.u32 %s4628_s25, 4  ;;  %s4385_s27 = int_to_ptr.vmem [resolvable:$false] %s4384_s27 }
  0x60   : > { %s4386_s18 = scalar_lea.vmem %s4385_s27, 4096  ;;  %p4387_p1 = scmp.lt.s32.totalorder %s4861_s11, %s4385_s27 }
  0x61   : > { %p4382_p7 = pnand %p4380_p2, %p4879_p5  ;;  %p4388_p12 = scmp.lt.s32.totalorder %s4386_s18, %s4379_s22 }
  0x63   : > { %p4383_p0 = pneg %p4382_p7  ;;  %p4389_p11 = por %p4388_p12, %p4387_p1 }
  0x65   : > { %p4390_p4 = pnand %p4389_p11, %p4383_p0 }
  0x67   : > { %4393 = shalt.err (!%p4390_p4)
}
  0x68   : > { %s6129_s28 = smov 128   ;;  %s6131_s6 = smov 8  }
  0x69   : > { %4029 = dma.hbm_to_vmem [thread:$0]  (!%p4867_p13), %s4858_s12, 2048, %s4861_s11, %s4873_s1, %s6129_s28, %s6129_s28, %s6131_s6  }
  0x6a   : > { %s6204_s2 = sld [smem:[#allocation78_spill]]  ;;  %p6205_p0 = scmp.ne.s32.totalorder %s6195_s24, 0 }
  0x6c   : > { %p6206_p1 = pneg %p6205_p0 }
  0x70   : > { %s4394_s22 = scalar_lea.hbm %s6204_s2, 96 }
  0x71   : > { %p4395_p12 = scmp.ne.s32.totalorder %s6204_s2, %s4394_s22  ;;  %p4401_p9 = scmp.lt.u32.totalorder %s4394_s22, %s6204_s2 }
  0x73   : > { %p4397_p3 = pnand %p4395_p12, %p6206_p1 }
  0x75   : > { %p4398_p8 = pneg %p4397_p3 }
  0x77   : > { %p4403_p6 = pnand %p4401_p9, %p4398_p8 }
  0x79   : > { %4406 = shalt.err (!%p4403_p6)
}
  0x7a   : > { %s4407_s11 = scalar_lea.vmem %s311_s8, 96  ;;  %p6207_p2 = pmov %p6206_p1 }
  0x7b   : > { %p4408_p10 = scmp.ne.s32.totalorder %s311_s8, %s4407_s11  ;;  %p4415_p4 = scmp.lt.s32.totalorder %s311_s8, %s311_s8 }
  0x7c   : > { %p4416_p13 = scmp.lt.s32.totalorder %s4407_s11, %s4407_s11 }
  0x7d   : > { %p4410_p7 = pnand %p4408_p10, %p6207_p2 }
  0x7e   : > { %p4417_p5 = por %p4416_p13, %p4415_p4 }
  0x7f   : > { %p4411_p11 = pneg %p4410_p7 }
  0x81   : > { %p4418_p1 = pnand %p4417_p5, %p4411_p11 }
  0x83   : > { %4421 = shalt.err (!%p4418_p1)
}
  0x84   : > { %4022 = dma.hbm_to_vmem [thread:$0]  (!%p6205_p0), %s6204_s2, 96, %s311_s8, [#allocation6]  }
  0x85   : > { %s47_s3 = sadd.s32 1, %s4618_s14  ;;  %s56_s21 = sadd.s32 1, %s4602_s10 }
  0x86   : > { %p6208_p13 = scmp.ne.s32.totalorder %s6197_s20, 0  ;;  %p63_p5 = scmp.ne.s32.totalorder %s4602_s10, %s4598_s9 }
  0x87   : > { %s321_s24 = sand.u32 1, %s4602_s10   ;;  %p6209_p3 = scmp.eq.s32.totalorder %s4622_s15, 0 }
  0x88   : > { %s6343_s3 = smov (!%p6208_p13, %s47_s3), %s4618_s14  ;;  %p6211_p9 = scmp.eq.s32.totalorder %s4755_s16, 3 }
  0x89   : > { %p49_p12 = scmp.ge.s32.totalorder %s6343_s3, 2  ;;  %p4937_p8 = por %p6209_p3, %p63_p5 }
  0x8a   : > { %p4943_p6 = por %p6211_p9, %p63_p5  ;;  %s3259_s20 = sshll.u32 %s321_s24, 7 }
  0x8b   : > { %s6345_s3 = smov (%p49_p12, %s6343_s3), 0  ;;  %s3556_s8 = sshll.u32 %s4614_s13, 5 }
  0x8c   : > { %s6212_s22 = scalar_select %p4943_p6, 1, 0 }
  0x8d   : > { %s51_s27 = ssub.s32 %s4618_s14, %s6345_s3  ;;  %s3262_s11 = sshll.u32 %s4618_s14, 6 }
  0x8e   : > { %6213 = sst [smem:[#allocation41_spill]] %s6212_s22  ;;  %s53_s18 = sor.u32 %s4839_s23, %s51_s27 }
  0x8f   : > { %p54_p0 = scmp.eq.s32.totalorder %s53_s18, 0  ;;  %s332_s12 = sadd.s32 %s3556_s8, %s3262_s11 }
  0x90   : > { %s3263_s30 = sshll.u32 %s332_s12, 6  ;;  %s325_s28 = scalar_lea.vmem [#allocation2], %s3259_s20 }
  0x91   : > { %s335_s6 = sshll.u32 %s325_s28, 4  ;;  %s4960_s22 = scalar_lea.hbm %s6095_s0, %s3263_s30  ;;  %s4962_s6 = int_to_ptr.vmem [resolvable:$true] %s335_s6 }
  0x92   : > { %s4955_s2 = scalar_select %p54_p0, %s4602_s10, %s56_s21  }
  0x93   : > { %p6214_p10 = scmp.lt.s32.totalorder %s4622_s15, 4  ;;  %s4976_s9 = scalar_lea.hbm %s6099_s4, %s4852_s17 }
  0x94   : > { %s371_s16 = scalar_lea.vmem [#allocation10], %s4849_s7  ;;  %s4981_s8 = scalar_lea.sflag [#allocation3], %s321_s24 }
  0x95   : > { %p4968_p2 = pnand %p6214_p10, %p4937_p8  ;;  %s379_s20 = sshll.u32 %s371_s16, 4  ;;  %s4979_s20 = int_to_ptr.vmem [resolvable:$true] %s379_s20 }
  0x96   : > { %s4422_s25 = scalar_lea.hbm %s4960_s22, 2048  ;;  %s4427_s11 = scalar_lea.hbm %s6095_s0, 8192 }
  0x97   : > { %p4423_p7 = scmp.ne.s32.totalorder %s4960_s22, %s4422_s25  ;;  %p4424_p11 = pneg %p4968_p2 }
  0x98   : > { %p4428_p13 = scmp.lt.u32.totalorder %s4960_s22, %s6095_s0  ;;  %p4429_p5 = scmp.lt.u32.totalorder %s4427_s11, %s4422_s25 }
  0x99   : > { %p4425_p4 = pnand %p4424_p11, %p4423_p7  ;;  %p4431_p3 = scmp.lt.u32.totalorder %s4422_s25, %s4960_s22 }
  0x9a   : > { %p4430_p12 = por %p4429_p5, %p4428_p13 }
  0x9b   : > { %p4426_p1 = pneg %p4425_p4 }
  0x9c   : > { %p4432_p8 = por %p4431_p3, %p4430_p12 }
  0x9e   : > { %p4433_p9 = pnand %p4432_p8, %p4426_p1 }
  0xa0   : > { %4436 = shalt.err (!%p4433_p9)
}
  0xa1   : > { %s4437_s24 = scalar_lea.vmem %s4962_s6, 2048  ;;  %s4631_s28 = smov [#allocation2]  }
  0xa2   : > { %p4438_p0 = scmp.ne.s32.totalorder %s4962_s6, %s4437_s24  ;;  %s4442_s21 = sshll.u32 %s4631_s28, 4  ;;  %s4443_s21 = int_to_ptr.vmem [resolvable:$false] %s4442_s21 }
  0xa3   : > { %s4444_s16 = scalar_lea.vmem %s4443_s21, 4096  ;;  %p4445_p4 = scmp.lt.s32.totalorder %s4962_s6, %s4443_s21 }
  0xa4   : > { %p4440_p10 = pnand %p4438_p0, %p4424_p11  ;;  %p4446_p13 = scmp.lt.s32.totalorder %s4444_s16, %s4437_s24 }
  0xa6   : > { %p4441_p7 = pneg %p4440_p10  ;;  %p4447_p5 = por %p4446_p13, %p4445_p4 }
  0xa8   : > { %p4448_p12 = pnand %p4447_p5, %p4441_p7 }
  0xaa   : > { %4451 = shalt.err (!%p4448_p12)
}
  0xab   : > { %s6216_s25 = smov 8   ;;  %s6217_s27 = smov 128  }
  0xac   : > { %4026 = dma.hbm_to_vmem [thread:$0]  (!%p4968_p2), %s4960_s22, 2048, %s4962_s6, %s4981_s8, %s6217_s27, %s6217_s27, %s6216_s25  }
  0xad   : > { %s4452_s18 = scalar_lea.hbm %s4976_s9, 2048  ;;  %p6218_p1 = scmp.ne.s32.totalorder %s6203_s19, 0 }
  0xae   : > { %p4453_p11 = scmp.ne.s32.totalorder %s4976_s9, %s4452_s18  ;;  %s4457_s23 = scalar_lea.hbm %s6099_s4, 4096 }
  0xaf   : > { %p4458_p9 = scmp.lt.u32.totalorder %s4976_s9, %s6099_s4  ;;  %p4459_p0 = scmp.lt.u32.totalorder %s4457_s23, %s4452_s18 }
  0xb0   : > { %p4455_p3 = pnand %p4453_p11, %p6218_p1  ;;  %p4461_p7 = scmp.lt.u32.totalorder %s4452_s18, %s4976_s9 }
  0xb1   : > { %p4460_p10 = por %p4459_p0, %p4458_p9 }
  0xb2   : > { %p4456_p8 = pneg %p4455_p3 }
  0xb3   : > { %p4462_p4 = por %p4461_p7, %p4460_p10 }
  0xb5   : > { %p4463_p13 = pnand %p4462_p4, %p4456_p8 }
  0xb7   : > { %4466 = shalt.err (!%p4463_p13)
}
  0xb8   : > { %s4467_s6 = scalar_lea.vmem %s4979_s20, 2048  ;;  %s4632_s22 = smov [#allocation10]  }
  0xb9   : > { %p4468_p2 = scmp.ne.s32.totalorder %s4979_s20, %s4467_s6  ;;  %s4472_s8 = sshll.u32 %s4632_s22, 4  ;;  %s4473_s8 = int_to_ptr.vmem [resolvable:$false] %s4472_s8 }
  0xba   : > { %s4474_s28 = scalar_lea.vmem %s4473_s8, 4096  ;;  %p4475_p11 = scmp.lt.s32.totalorder %s4979_s20, %s4473_s8 }
  0xbb   : > { %p4470_p5 = pnand %p4468_p2, %p6218_p1  ;;  %p4476_p3 = scmp.lt.s32.totalorder %s4474_s28, %s4467_s6 }
  0xbd   : > { %p4471_p12 = pneg %p4470_p5  ;;  %p4477_p9 = por %p4476_p3, %p4475_p11 }
  0xbf   : > { %p4478_p0 = pnand %p4477_p9, %p4471_p12 }
  0xc1   : > { %4481 = shalt.err (!%p4478_p0)
}
  0xc2   : > { %p6219_p8 = scmp.ne.s32.totalorder %s6202_s26, 0  ;;  %s5041_s18 = scalar_lea.hbm %s6100_s5, %s4852_s17 }
  0xc3   : > { %s393_s11 = scalar_lea.vmem [#allocation11], %s4849_s7  ;;  %s6220_s23 = sand.u32 1, %s4590_s29  }
  0xc4   : > { %4032 = dma.hbm_to_vmem [thread:$0]  (!%p6219_p8), %s4976_s9, 2048, %s4979_s20, %s4873_s1, %s6217_s27, %s6217_s27, %s6216_s25  }
  0xc5   : > { %s401_s12 = sshll.u32 %s393_s11, 4  ;;  %s5048_s30 = scalar_lea.sflag [#allocation12], %s6220_s23  ;;  %s5044_s12 = int_to_ptr.vmem [resolvable:$true] %s401_s12 }
  0xc6   : > { %s4482_s24 = scalar_lea.hbm %s5041_s18, 2048  ;;  %s4487_s17 = scalar_lea.hbm %s6100_s5, 4096 }
  0xc7   : > { %p4483_p10 = scmp.ne.s32.totalorder %s5041_s18, %s4482_s24  ;;  %p4488_p13 = scmp.lt.u32.totalorder %s5041_s18, %s6100_s5 }
  0xc8   : > { %p4489_p2 = scmp.lt.u32.totalorder %s4487_s17, %s4482_s24  ;;  %p4491_p12 = scmp.lt.u32.totalorder %s4482_s24, %s5041_s18 }
  0xc9   : > { %p4485_p7 = pnand %p4483_p10, %p6218_p1 }
  0xca   : > { %p4490_p5 = por %p4489_p2, %p4488_p13 }
  0xcb   : > { %p4486_p4 = pneg %p4485_p7 }
  0xcc   : > { %p4492_p11 = por %p4491_p12, %p4490_p5 }
  0xce   : > { %p4493_p3 = pnand %p4492_p11, %p4486_p4 }
  0xd0   : > { %4496 = shalt.err (!%p4493_p3)
}
  0xd1   : > { %s4497_s7 = scalar_lea.vmem %s5044_s12, 2048  ;;  %s4633_s22 = smov [#allocation11]  }
  0xd2   : > { %p4498_p9 = scmp.ne.s32.totalorder %s5044_s12, %s4497_s7  ;;  %s4502_s8 = sshll.u32 %s4633_s22, 4  ;;  %s4503_s8 = int_to_ptr.vmem [resolvable:$false] %s4502_s8 }
  0xd3   : > { %s4504_s28 = scalar_lea.vmem %s4503_s8, 4096  ;;  %p4505_p7 = scmp.lt.s32.totalorder %s5044_s12, %s4503_s8 }
  0xd4   : > { %p4500_p0 = pnand %p4498_p9, %p6218_p1  ;;  %p4506_p6 = scmp.lt.s32.totalorder %s4504_s28, %s4497_s7 }
  0xd6   : > { %p4501_p10 = pneg %p4500_p0  ;;  %p4507_p13 = por %p4506_p6, %p4505_p7 }
  0xd8   : > { %p4508_p2 = pnand %p4507_p13, %p4501_p10 }
  0xda   : > { %4511 = shalt.err (!%p4508_p2)
}
  0xdb   : > { %4035 = dma.hbm_to_vmem [thread:$0]  (!%p6219_p8), %s5041_s18, 2048, %s5044_s12, %s5048_s30, %s6217_s27, %s6217_s27, %s6216_s25  }
  0xdc   : > { %s6221_s19 = sld [smem:[#allocation38_spill]] }
  0xe2   : > { %p6222_p1 = scmp.ne.s32.totalorder %s6221_s19, 0 }
  0xe4   : > { %413 = sbr.rel (%p6222_p1) target bundleno = 832 (0x340), region = 44 }
  0xeb   : > { %s6223_s21 = sld [smem:[#allocation31_spill]]  ;;  %s6224_s16 = sld [smem:[#allocation35_spill]] }
  0xf1   : > { %s5078_s11 = sand.u32 1, %s6223_s21   ;;  %p6225_p6 = scmp.ne.s32.totalorder %s6224_s16, 0 }
  0xf2   : > { %s5081_s23 = sshll.u32 %s5078_s11, 7  ;;  %s416_s26 = scalar_lea.sflag [#allocation3], %s5078_s11 }
  0xf3   : > { %s5085_s24 = scalar_lea.vmem [#allocation2], %s5081_s23 }
  0xf4   : > { %4557 = dma.done.wait (%p6225_p6), %s416_s26, 2048  }
  0xf5   : > { %4559 = vsyncadd (%p6225_p6), %s416_s26, 4294965248  ;;  %s6226_s25 = sld [smem:[#allocation34_spill]] }
  0xfb   : > { %p6227_p8 = scmp.eq.s32.totalorder %s6226_s25, 0 }
  0xfd   : > { %4561 = dma.done.wait (%p6227_p8), [#allocation6], 12384   ;;  %p6228_p4 = pmov %p6227_p8 }
  0xfe   : > { %s6229_s27 = sld [smem:[#allocation29_spill]]  ;;  %s6230_s18 = sld [smem:[#allocation36_spill]] }
  0xff   : > { %4563 = vsyncadd (%p6228_p4), [#allocation6], 4294954912  ;;  %s432_s12 = sand.u32 1, %s6226_s25  }
 0x100   : > { %s433_s9 = scalar_lea.sflag [#allocation9], %s432_s12 }
 0x104   : > { %s434_s30 = sand.u32 1, %s6229_s27   ;;  %p6231_p5 = scmp.ne.s32.totalorder %s6230_s18, 0 }
 0x105   : > { %s3280_s1 = sshll.u32 %s434_s30, 7 }
 0x106   : > { %s5099_s17 = scalar_lea.vmem [#allocation8], %s3280_s1 }
 0x107   : > { %4565 = dma.done.wait (%p6231_p5), %s433_s9, 4096  }
 0x108   : > { %4567 = vsyncadd (%p6231_p5), %s433_s9, 4294963200  ;;  %s5105_s20 = scalar_lea.vmem [#allocation10], %s3280_s1  ;;  %s451_s6 = scalar_lea.sflag [#allocation12], %s434_s30 }
 0x109   : > { %s5107_s7 = scalar_lea.vmem [#allocation11], %s3280_s1 }
 0x10a   : > { %4569 = dma.done.wait (%p6231_p5), %s451_s6, 2048  }
 0x10b   : > { %4571 = vsyncadd (%p6231_p5), %s451_s6, 4294965248  ;;  %v4168_v0 = vld [vmem:[#allocation5 + $0x4] ss:$24 sps:$4 sm:$0xff]   ;;  %v4172_v2 = vld [vmem:[#allocation5] ss:$24 sps:$4 sm:$0xff]   ;;  %s4634_s22 = smov 64  }
 0x10c   : > { %v4170_v1 = vld [vmem:[#allocation5 + $0xc] ss:$24 sps:$4 sm:$0xff]   ;;  %1223 = vmatprep.subr.bf16.mxu0 %v4168_v0  ;;  %v4173_v3 = vld [vmem:[#allocation5 + $0x8] ss:$24 sps:$4 sm:$0xff]   ;;  %v4176_v5 = vld [vmem:[#allocation5 + $0x3c] ss:$24 sps:$4 sm:$0xff]  }
 0x10d   : > { %1336 = vmatprep.subr.bf16.mxu1 %v4170_v1  ;;  %v4174_v4 = vld [vmem:[#allocation5 + $0x34] ss:$24 sps:$4 sm:$0xff]   ;;  %1224 = vmatpush1.bf16.msra.mxu0 %v4172_v2  ;;  %v4178_v6 = vld [vmem:[#allocation5 + $0x30] ss:$24 sps:$4 sm:$0xff]   ;;  %v4180_v8 = vld [vmem:[#allocation5 + $0x64] ss:$24 sps:$4 sm:$0xff]  }
 0x10e   : > { %1337 = vmatpush1.bf16.msra.mxu1 %v4173_v3  ;;  %1225 = vmatprep.subr.bf16.mxu0 %v4174_v4  ;;  %v4179_v7 = vld [vmem:[#allocation5 + $0x38] ss:$24 sps:$4 sm:$0xff]   ;;  %v4182_v9 = vld [vmem:[#allocation5 + $0x6c] ss:$24 sps:$4 sm:$0xff]   ;;  %v4185_v11 = vld [vmem:[#allocation5 + $0x68] ss:$24 sps:$4 sm:$0xff]  }
 0x10f   : > { %1338 = vmatprep.subr.bf16.mxu1 %v4176_v5  ;;  %v4184_v10 = vld [vmem:[#allocation5 + $0x60] ss:$24 sps:$4 sm:$0xff]   ;;  %v4186_v12 = vld [vmem:[#allocation5 + $0x94] ss:$24 sps:$4 sm:$0xff]   ;;  %v4190_v14 = vld [vmem:[#allocation5 + $0x90] ss:$24 sps:$4 sm:$0xff]  }
 0x110   : > { %v4188_v13 = vld [vmem:[#allocation5 + $0x9c] ss:$24 sps:$4 sm:$0xff]   ;;  %v4191_v15 = vld [vmem:[#allocation5 + $0x98] ss:$24 sps:$4 sm:$0xff]   ;;  %v4194_v17 = vld [vmem:[#allocation5 + $0xcc] ss:$24 sps:$4 sm:$0xff]  }
 0x111   : > { %1226 = vmatpush1.bf16.msra.mxu0 %v4178_v6  ;;  %v4192_v16 = vld [vmem:[#allocation5 + $0xc4] ss:$24 sps:$4 sm:$0xff]   ;;  %v4196_v18 = vld [vmem:[#allocation5 + $0xc0] ss:$24 sps:$4 sm:$0xff]   ;;  %v4198_v20 = vld [vmem:[#allocation5 + $0xf4] ss:$24 sps:$4 sm:$0xff]  }
 0x112   : > { %1339 = vmatpush1.bf16.msra.mxu1 %v4179_v7  ;;  %1227 = vmatprep.subr.bf16.mxu0 %v4180_v8  ;;  %v4197_v19 = vld [vmem:[#allocation5 + $0xc8] ss:$24 sps:$4 sm:$0xff]   ;;  %v4200_v21 = vld [vmem:[#allocation5 + $0xfc] ss:$24 sps:$4 sm:$0xff]   ;;  %v4203_v23 = vld [vmem:[#allocation5 + $0xf8] ss:$24 sps:$4 sm:$0xff]  }
 0x113   : > { %1340 = vmatprep.subr.bf16.mxu1 %v4182_v9  ;;  %v4202_v22 = vld [vmem:[#allocation5 + $0xf0] ss:$24 sps:$4 sm:$0xff]   ;;  %v4204_v24 = vld [vmem:[#allocation5 + $0x124] ss:$24 sps:$4 sm:$0xff]   ;;  %v4208_v26 = vld [vmem:[#allocation5 + $0x120] ss:$24 sps:$4 sm:$0xff]  }
 0x114   : > { %v4206_v25 = vld [vmem:[#allocation5 + $0x12c] ss:$24 sps:$4 sm:$0xff]   ;;  %v4209_v27 = vld [vmem:[#allocation5 + $0x128] ss:$24 sps:$4 sm:$0xff]   ;;  %v4212_v29 = vld [vmem:[#allocation5 + $0x15c] ss:$24 sps:$4 sm:$0xff]  }
 0x115   : > { %1228 = vmatpush1.bf16.msra.mxu0 %v4184_v10  ;;  %v4210_v28 = vld [vmem:[#allocation5 + $0x154] ss:$24 sps:$4 sm:$0xff]   ;;  %v4214_v30 = vld [vmem:[#allocation5 + $0x150] ss:$24 sps:$4 sm:$0xff]   ;;  %v4216_v32 = vld [vmem:[#allocation5 + $0x184] ss:$24 sps:$4 sm:$0xff]  }
 0x116   : > { %1341 = vmatpush1.bf16.msra.mxu1 %v4185_v11  ;;  %1229 = vmatprep.subr.bf16.mxu0 %v4186_v12  ;;  %v4215_v31 = vld [vmem:[#allocation5 + $0x158] ss:$24 sps:$4 sm:$0xff]   ;;  %v4218_v33 = vld [vmem:[#allocation5 + $0x18c] ss:$24 sps:$4 sm:$0xff]   ;;  %v4221_v35 = vld [vmem:[#allocation5 + $0x188] ss:$24 sps:$4 sm:$0xff]  }
 0x117   : > { %1342 = vmatprep.subr.bf16.mxu1 %v4188_v13  ;;  %v4220_v34 = vld [vmem:[#allocation5 + $0x180] ss:$24 sps:$4 sm:$0xff]   ;;  %v4222_v36 = vld [vmem:[#allocation5 + $0x1b4] ss:$24 sps:$4 sm:$0xff]   ;;  %v4226_v38 = vld [vmem:[#allocation5 + $0x1b0] ss:$24 sps:$4 sm:$0xff]  }
 0x118   : > { %v4224_v37 = vld [vmem:[#allocation5 + $0x1bc] ss:$24 sps:$4 sm:$0xff]   ;;  %v4227_v39 = vld [vmem:[#allocation5 + $0x1b8] ss:$24 sps:$4 sm:$0xff]   ;;  %v4230_v41 = vld [vmem:[#allocation5 + $0x1ec] ss:$24 sps:$4 sm:$0xff]  }
 0x119   : > { %1230 = vmatpush1.bf16.msra.mxu0 %v4190_v14  ;;  %v4228_v40 = vld [vmem:[#allocation5 + $0x1e4] ss:$24 sps:$4 sm:$0xff]   ;;  %v4232_v42 = vld [vmem:[#allocation5 + $0x1e0] ss:$24 sps:$4 sm:$0xff]   ;;  %v4234_v44 = vld [vmem:[#allocation5 + $0x214] ss:$24 sps:$4 sm:$0xff]  }
 0x11a   : > { %1343 = vmatpush1.bf16.msra.mxu1 %v4191_v15  ;;  %1231 = vmatprep.subr.bf16.mxu0 %v4192_v16  ;;  %v4233_v43 = vld [vmem:[#allocation5 + $0x1e8] ss:$24 sps:$4 sm:$0xff]   ;;  %v4236_v45 = vld [vmem:[#allocation5 + $0x21c] ss:$24 sps:$4 sm:$0xff]   ;;  %v4239_v47 = vld [vmem:[#allocation5 + $0x218] ss:$24 sps:$4 sm:$0xff]  }
 0x11b   : > { %1344 = vmatprep.subr.bf16.mxu1 %v4194_v17  ;;  %v4238_v46 = vld [vmem:[#allocation5 + $0x210] ss:$24 sps:$4 sm:$0xff]   ;;  %v5114_v48 = vld [vmem:[%s5085_s24 + $0x4] ss:$8 sps:$4 sm:$0xff]   ;;  %v4244_v51 = vld [vmem:[#allocation5 + $0x240] ss:$24 sps:$4 sm:$0xff]  }
 0x11c   : > { %v4240_v49 = vld [vmem:[#allocation5 + $0x244] ss:$24 sps:$4 sm:$0xff]   ;;  %1255 = vmatprep.mubr.bf16.mxu0 %v5114_v48  ;;  %1368 = vmatprep.mubr.bf16.mxu1 %v5114_v48  ;;  %v4245_v52 = vld [vmem:[#allocation5 + $0x248] ss:$24 sps:$4 sm:$0xff]   ;;  %v4246_v53 = vld [vmem:[#allocation5 + $0x274] ss:$24 sps:$4 sm:$0xff]  }
 0x11d   : > { %1232 = vmatpush1.bf16.msra.mxu0 %v4196_v18  ;;  %v4242_v50 = vld [vmem:[#allocation5 + $0x24c] ss:$24 sps:$4 sm:$0xff]   ;;  %v4248_v54 = vld [vmem:[#allocation5 + $0x27c] ss:$24 sps:$4 sm:$0xff]   ;;  %v4250_v55 = vld [vmem:[#allocation5 + $0x270] ss:$24 sps:$4 sm:$0xff]  }
 0x11e   : > { %1345 = vmatpush1.bf16.msra.mxu1 %v4197_v19  ;;  %1233 = vmatprep.subr.bf16.mxu0 %v4198_v20  ;;  %v4251_v56 = vld [vmem:[#allocation5 + $0x278] ss:$24 sps:$4 sm:$0xff]   ;;  %v4252_v57 = vld [vmem:[#allocation5 + $0x2a4] ss:$24 sps:$4 sm:$0xff]   ;;  %v4257_v60 = vld [vmem:[#allocation5 + $0x2a8] ss:$24 sps:$4 sm:$0xff]  }
 0x11f   : > { %1346 = vmatprep.subr.bf16.mxu1 %v4200_v21  ;;  %v4254_v58 = vld [vmem:[#allocation5 + $0x2ac] ss:$24 sps:$4 sm:$0xff]   ;;  %v4256_v59 = vld [vmem:[#allocation5 + $0x2a0] ss:$24 sps:$4 sm:$0xff]   ;;  %v4260_v62 = vld [vmem:[#allocation5 + $0x2dc] ss:$24 sps:$4 sm:$0xff]  }
 0x120   : > { %v4258_v61 = vld [vmem:[#allocation5 + $0x2d4] ss:$24 sps:$4 sm:$0xff]   ;;  %v4262_v63 = vld [vmem:[#allocation5 + $0x2d0] ss:$24 sps:$4 sm:$0xff]   ;;  %v4293_v5 = vld [vmem:[#allocation5 + $0x44] ss:$24 sps:$4 sm:$0xff]  }
 0x121   : > { %1234 = vmatpush1.bf16.msra.mxu0 %v4202_v22  ;;  %v4263_v0 = vld [vmem:[#allocation5 + $0x2d8] ss:$24 sps:$4 sm:$0xff]   ;;  %v4290_v1 = vld [vmem:[#allocation5 + $0x14] ss:$24 sps:$4 sm:$0xff]   ;;  %v5119_v2 = vld [vmem:[%s5085_s24] ss:$8 sps:$4 sm:$0xff]  }
 0x122   : > { %1347 = vmatpush1.bf16.msra.mxu1 %v4203_v23  ;;  %1235 = vmatprep.subr.bf16.mxu0 %v4204_v24  ;;  %v5122_v3 = vld [vmem:[%s5085_s24 + $0x14] ss:$8 sps:$4 sm:$0xff]   ;;  %v4288_v4 = vld [vmem:[#allocation5 + $0x10] ss:$24 sps:$4 sm:$0xff]   ;;  %v4291_v6 = vld [vmem:[#allocation5 + $0x40] ss:$24 sps:$4 sm:$0xff]  }
 0x123   : > { %1348 = vmatprep.subr.bf16.mxu1 %v4206_v25  ;;  %v4296_v7 = vld [vmem:[#allocation5 + $0x74] ss:$24 sps:$4 sm:$0xff]   ;;  %v5129_v8 = vld [vmem:[%s5085_s24 + $0x10] ss:$8 sps:$4 sm:$0xff]   ;;  %v4299_v11 = vld [vmem:[#allocation5 + $0xa4] ss:$24 sps:$4 sm:$0xff]  }
 0x124   : > { %v5132_v9 = vld [vmem:[%s5085_s24 + $0x24] ss:$8 sps:$4 sm:$0xff]   ;;  %v4294_v10 = vld [vmem:[#allocation5 + $0x70] ss:$24 sps:$4 sm:$0xff]   ;;  %v4297_v12 = vld [vmem:[#allocation5 + $0xa0] ss:$24 sps:$4 sm:$0xff]  }
 0x125   : > { %1236 = vmatpush1.bf16.msra.mxu0 %v4208_v26  ;;  %v4302_v13 = vld [vmem:[#allocation5 + $0xd4] ss:$24 sps:$4 sm:$0xff]   ;;  %v5139_v14 = vld [vmem:[%s5085_s24 + $0x20] ss:$8 sps:$4 sm:$0xff]   ;;  %v4305_v17 = vld [vmem:[#allocation5 + $0x104] ss:$24 sps:$4 sm:$0xff]  }
 0x126   : > { %1349 = vmatpush1.bf16.msra.mxu1 %v4209_v27  ;;  %1237 = vmatprep.subr.bf16.mxu0 %v4210_v28  ;;  %v5142_v15 = vld [vmem:[%s5085_s24 + $0x34] ss:$8 sps:$4 sm:$0xff]   ;;  %v4300_v16 = vld [vmem:[#allocation5 + $0xd0] ss:$24 sps:$4 sm:$0xff]   ;;  %v4303_v18 = vld [vmem:[#allocation5 + $0x100] ss:$24 sps:$4 sm:$0xff]  }
 0x127   : > { %1350 = vmatprep.subr.bf16.mxu1 %v4212_v29  ;;  %v4308_v19 = vld [vmem:[#allocation5 + $0x134] ss:$24 sps:$4 sm:$0xff]   ;;  %v5149_v20 = vld [vmem:[%s5085_s24 + $0x30] ss:$8 sps:$4 sm:$0xff]   ;;  %v4311_v23 = vld [vmem:[#allocation5 + $0x164] ss:$24 sps:$4 sm:$0xff]  }
 0x128   : > { %v5152_v21 = vld [vmem:[%s5085_s24 + $0x44] ss:$8 sps:$4 sm:$0xff]   ;;  %v4306_v22 = vld [vmem:[#allocation5 + $0x130] ss:$24 sps:$4 sm:$0xff]   ;;  %v4309_v24 = vld [vmem:[#allocation5 + $0x160] ss:$24 sps:$4 sm:$0xff]  }
 0x129   : > { %1238 = vmatpush1.bf16.msra.mxu0 %v4214_v30  ;;  %v4314_v25 = vld [vmem:[#allocation5 + $0x194] ss:$24 sps:$4 sm:$0xff]   ;;  %v5159_v26 = vld [vmem:[%s5085_s24 + $0x40] ss:$8 sps:$4 sm:$0xff]   ;;  %v4317_v29 = vld [vmem:[#allocation5 + $0x1c4] ss:$24 sps:$4 sm:$0xff]  }
 0x12a   : > { %1351 = vmatpush1.bf16.msra.mxu1 %v4215_v31  ;;  %1239 = vmatprep.subr.bf16.mxu0 %v4216_v32  ;;  %v5162_v27 = vld [vmem:[%s5085_s24 + $0x54] ss:$8 sps:$4 sm:$0xff]   ;;  %v4312_v28 = vld [vmem:[#allocation5 + $0x190] ss:$24 sps:$4 sm:$0xff]   ;;  %v4315_v30 = vld [vmem:[#allocation5 + $0x1c0] ss:$24 sps:$4 sm:$0xff]  }
 0x12b   : > { %1352 = vmatprep.subr.bf16.mxu1 %v4218_v33  ;;  %v4320_v31 = vld [vmem:[#allocation5 + $0x1f4] ss:$24 sps:$4 sm:$0xff]   ;;  %v4281_v32 = vld [vmem:[%s5085_s24 + $0x50] ss:$8 sps:$4 sm:$0xff]   ;;  %s5540_s8 = scalar_lea.vmem [#allocation16], %s5081_s23  ;;  %vm1802_vm0 = vcmask 523264  }
 0x12c   : > { %v4282_v33 = vld [vmem:[%s5085_s24 + $0x64] ss:$8 sps:$4 sm:$0xff]   ;;  %s5681_s28 = scalar_lea.vmem [#allocation13], %s5081_s23  ;;  %s5714_s19 = scalar_lea.vmem [#allocation14], %s5081_s23 }
 0x12d   : > { %1240 = vmatpush1.bf16.msra.mxu0 %v4220_v34  ;;  %v4318_v34 = vld [vmem:[#allocation5 + $0x1f0] ss:$24 sps:$4 sm:$0xff]   ;;  %s2863_s21 = scalar_lea.sflag [#allocation4], %s5078_s11  ;;  %s5991_s16 = scalar_lea.sflag [#allocation15], %s432_s12 }
 0x12e   : > { %1353 = vmatpush1.bf16.msra.mxu1 %v4221_v35  ;;  %1241 = vmatprep.subr.bf16.mxu0 %v4222_v36  ;;  %v4323_v35 = vld [vmem:[#allocation5 + $0x224] ss:$24 sps:$4 sm:$0xff]   ;;  %v4321_v36 = vld [vmem:[#allocation5 + $0x220] ss:$24 sps:$4 sm:$0xff]  }
 0x12f   : > { %1354 = vmatprep.subr.bf16.mxu1 %v4224_v37  ;;  %v4326_v37 = vld [vmem:[#allocation5 + $0x254] ss:$24 sps:$4 sm:$0xff]  }
 0x131   : > { %1242 = vmatpush1.bf16.msra.mxu0 %v4226_v38  ;;  %v4284_v38 = vld [vmem:[%s5085_s24 + $0x60] ss:$8 sps:$4 sm:$0xff]  }
 0x132   : > { %1355 = vmatpush1.bf16.msra.mxu1 %v4227_v39  ;;  %1243 = vmatprep.subr.bf16.mxu0 %v4228_v40  ;;  %v4285_v39 = vld [vmem:[%s5085_s24 + $0x74] ss:$8 sps:$4 sm:$0xff]   ;;  %v4324_v40 = vld [vmem:[#allocation5 + $0x250] ss:$24 sps:$4 sm:$0xff]  }
 0x133   : > { %1356 = vmatprep.subr.bf16.mxu1 %v4230_v41  ;;  %v4329_v41 = vld [vmem:[#allocation5 + $0x284] ss:$24 sps:$4 sm:$0xff]  }
 0x135   : > { %1244 = vmatpush1.bf16.msra.mxu0 %v4232_v42  ;;  %v4327_v42 = vld [vmem:[#allocation5 + $0x280] ss:$24 sps:$4 sm:$0xff]  }
 0x136   : > { %1357 = vmatpush1.bf16.msra.mxu1 %v4233_v43  ;;  %1245 = vmatprep.subr.bf16.mxu0 %v4234_v44  ;;  %v4332_v43 = vld [vmem:[#allocation5 + $0x2b4] ss:$24 sps:$4 sm:$0xff]   ;;  %v4287_v44 = vld [vmem:[%s5085_s24 + $0x70] ss:$8 sps:$4 sm:$0xff]  }
 0x137   : > { %1358 = vmatprep.subr.bf16.mxu1 %v4236_v45  ;;  %v4330_v45 = vld [vmem:[#allocation5 + $0x2b0] ss:$24 sps:$4 sm:$0xff]  }
 0x139   : > { %1246 = vmatpush1.bf16.msra.mxu0 %v4238_v46  ;;  %v4335_v46 = vld [vmem:[#allocation5 + $0x2e4] ss:$24 sps:$4 sm:$0xff]  }
 0x13a   : > { %1359 = vmatpush1.bf16.msra.mxu1 %v4239_v47  ;;  %1247 = vmatprep.subr.bf16.mxu0 %v4240_v49  ;;  %v4333_v47 = vld [vmem:[#allocation5 + $0x2e0] ss:$24 sps:$4 sm:$0xff]  }
 0x13b   : > { %1360 = vmatprep.subr.bf16.mxu1 %v4242_v50 }
 0x13d   : > { %1248 = vmatpush1.bf16.msra.mxu0 %v4244_v51  ;;  %v5187_v51 = vld [vmem:[#allocation7] sm:$0x3f] }
 0x13e   : > { %1361 = vmatpush1.bf16.msra.mxu1 %v4245_v52  ;;  %1249 = vmatprep.subr.bf16.mxu0 %v4246_v53 }
 0x13f   : > { %1362 = vmatprep.subr.bf16.mxu1 %v4248_v54 }
 0x141   : > { %1250 = vmatpush1.bf16.msra.mxu0 %v4250_v55 }
 0x142   : > { %1363 = vmatpush1.bf16.msra.mxu1 %v4251_v56  ;;  %1251 = vmatprep.subr.bf16.mxu0 %v4252_v57 }
 0x143   : > { %1364 = vmatprep.subr.bf16.mxu1 %v4254_v58 }
 0x145   : > { %1252 = vmatpush1.bf16.msra.mxu0 %v4256_v59 }
 0x146   : > { %1365 = vmatpush1.bf16.msra.mxu1 %v4257_v60  ;;  %1253 = vmatprep.subr.bf16.mxu0 %v4258_v61 }
 0x147   : > { %1366 = vmatprep.subr.bf16.mxu1 %v4260_v62 }
 0x149   : > { %1254 = vmatpush1.bf16.msra.mxu0 %v4262_v63 }
 0x14a   : > { %1367 = vmatpush1.bf16.msra.mxu1 %v4263_v0  ;;  %1449 = vmatprep.subr.bf16.mxu0 %v4290_v1 }
 0x14b   : > { %3944 = vmatprep.subr.bf16.mxu1 %v4290_v1 }
 0x14c   : > { %1256 = vmatmul.mubr.bf16.vlgmr.msra.gmra.mrb[0].mxu0 %v5119_v2 }
 0x14d   : > { %1369 = vmatmul.mubr.bf16.vlgmr.msra.gmra.mrb[0].mxu1 %v5119_v2  ;;  %1265 = vmatprep.mubr.bf16.mxu0 %v5122_v3 }
 0x14e   : > { %1378 = vmatprep.mubr.bf16.mxu1 %v5122_v3  ;;  %1450 = vmatpush1.bf16.msra.mxu0 %v4288_v4 }
 0x14f   : > { %3960 = vmatpush1.bf16.msra.mxu1 %v4288_v4  ;;  %1451 = vmatprep.subr.bf16.mxu0 %v4293_v5 }
 0x150   : > { %3945 = vmatprep.subr.bf16.mxu1 %v4293_v5 }
 0x152   : > { %1452 = vmatpush1.bf16.msra.mxu0 %v4291_v6 }
 0x153   : > { %3961 = vmatpush1.bf16.msra.mxu1 %v4291_v6  ;;  %1453 = vmatprep.subr.bf16.mxu0 %v4296_v7 }
 0x154   : > { %3946 = vmatprep.subr.bf16.mxu1 %v4296_v7  ;;  %1266 = vmatmul.mubr.bf16.gmra.mrb[4].mxu0 %v5129_v8 }
 0x155   : > { %1379 = vmatmul.mubr.bf16.gmra.mrb[4].mxu1 %v5129_v8  ;;  %1275 = vmatprep.mubr.bf16.mxu0 %v5132_v9 }
 0x156   : > { %1388 = vmatprep.mubr.bf16.mxu1 %v5132_v9  ;;  %1454 = vmatpush1.bf16.msra.mxu0 %v4294_v10 }
 0x157   : > { %3962 = vmatpush1.bf16.msra.mxu1 %v4294_v10  ;;  %1455 = vmatprep.subr.bf16.mxu0 %v4299_v11 }
 0x158   : > { %3947 = vmatprep.subr.bf16.mxu1 %v4299_v11 }
 0x15a   : > { %1456 = vmatpush1.bf16.msra.mxu0 %v4297_v12 }
 0x15b   : > { %3963 = vmatpush1.bf16.msra.mxu1 %v4297_v12  ;;  %1457 = vmatprep.subr.bf16.mxu0 %v4302_v13 }
 0x15c   : > { %3948 = vmatprep.subr.bf16.mxu1 %v4302_v13  ;;  %1276 = vmatmul.mubr.bf16.gmra.mrb[8].mxu0 %v5139_v14 }
 0x15d   : > { %1389 = vmatmul.mubr.bf16.gmra.mrb[8].mxu1 %v5139_v14  ;;  %1285 = vmatprep.mubr.bf16.mxu0 %v5142_v15 }
 0x15e   : > { %1398 = vmatprep.mubr.bf16.mxu1 %v5142_v15  ;;  %1458 = vmatpush1.bf16.msra.mxu0 %v4300_v16 }
 0x15f   : > { %3964 = vmatpush1.bf16.msra.mxu1 %v4300_v16  ;;  %1459 = vmatprep.subr.bf16.mxu0 %v4305_v17 }
 0x160   : > { %3949 = vmatprep.subr.bf16.mxu1 %v4305_v17 }
 0x162   : > { %1460 = vmatpush1.bf16.msra.mxu0 %v4303_v18 }
 0x163   : > { %3965 = vmatpush1.bf16.msra.mxu1 %v4303_v18  ;;  %1461 = vmatprep.subr.bf16.mxu0 %v4308_v19 }
 0x164   : > { %3950 = vmatprep.subr.bf16.mxu1 %v4308_v19  ;;  %1286 = vmatmul.mubr.bf16.gmra.mrb[12].mxu0 %v5149_v20 }
 0x165   : > { %1399 = vmatmul.mubr.bf16.gmra.mrb[12].mxu1 %v5149_v20  ;;  %1295 = vmatprep.mubr.bf16.mxu0 %v5152_v21 }
 0x166   : > { %1408 = vmatprep.mubr.bf16.mxu1 %v5152_v21  ;;  %1462 = vmatpush1.bf16.msra.mxu0 %v4306_v22 }
 0x167   : > { %3966 = vmatpush1.bf16.msra.mxu1 %v4306_v22  ;;  %1463 = vmatprep.subr.bf16.mxu0 %v4311_v23 }
 0x168   : > { %3951 = vmatprep.subr.bf16.mxu1 %v4311_v23 }
 0x16a   : > { %1464 = vmatpush1.bf16.msra.mxu0 %v4309_v24 }
 0x16b   : > { %3967 = vmatpush1.bf16.msra.mxu1 %v4309_v24  ;;  %1465 = vmatprep.subr.bf16.mxu0 %v4314_v25 }
 0x16c   : > { %3952 = vmatprep.subr.bf16.mxu1 %v4314_v25  ;;  %1296 = vmatmul.mubr.bf16.gmra.mrb[16].mxu0 %v5159_v26 }
 0x16d   : > { %1409 = vmatmul.mubr.bf16.gmra.mrb[16].mxu1 %v5159_v26  ;;  %1305 = vmatprep.mubr.bf16.mxu0 %v5162_v27 }
 0x16e   : > { %1418 = vmatprep.mubr.bf16.mxu1 %v5162_v27  ;;  %1466 = vmatpush1.bf16.msra.mxu0 %v4312_v28 }
 0x16f   : > { %3968 = vmatpush1.bf16.msra.mxu1 %v4312_v28  ;;  %1467 = vmatprep.subr.bf16.mxu0 %v4317_v29 }
 0x170   : > { %3953 = vmatprep.subr.bf16.mxu1 %v4317_v29 }
 0x172   : > { %1468 = vmatpush1.bf16.msra.mxu0 %v4315_v30 }
 0x173   : > { %3969 = vmatpush1.bf16.msra.mxu1 %v4315_v30  ;;  %1469 = vmatprep.subr.bf16.mxu0 %v4320_v31 }
 0x174   : > { %3954 = vmatprep.subr.bf16.mxu1 %v4320_v31  ;;  %1306 = vmatmul.mubr.bf16.gmra.mrb[20].mxu0 %v4281_v32 }
 0x175   : > { %1419 = vmatmul.mubr.bf16.gmra.mrb[20].mxu1 %v4281_v32  ;;  %1315 = vmatprep.mubr.bf16.mxu0 %v4282_v33 }
 0x176   : > { %1428 = vmatprep.mubr.bf16.mxu1 %v4282_v33  ;;  %1470 = vmatpush1.bf16.msra.mxu0 %v4318_v34 }
 0x177   : > { %3970 = vmatpush1.bf16.msra.mxu1 %v4318_v34  ;;  %1471 = vmatprep.subr.bf16.mxu0 %v4323_v35 }
 0x178   : > { %3955 = vmatprep.subr.bf16.mxu1 %v4323_v35 }
 0x17a   : > { %1472 = vmatpush1.bf16.msra.mxu0 %v4321_v36 }
 0x17b   : > { %3971 = vmatpush1.bf16.msra.mxu1 %v4321_v36  ;;  %1473 = vmatprep.subr.bf16.mxu0 %v4326_v37 }
 0x17c   : > { %3956 = vmatprep.subr.bf16.mxu1 %v4326_v37  ;;  %1316 = vmatmul.mubr.bf16.gmra.mrb[24].mxu0 %v4284_v38 }
 0x17d   : > { %1429 = vmatmul.mubr.bf16.gmra.mrb[24].mxu1 %v4284_v38  ;;  %1325 = vmatprep.mubr.bf16.mxu0 %v4285_v39 }
 0x17e   : > { %1438 = vmatprep.mubr.bf16.mxu1 %v4285_v39  ;;  %1474 = vmatpush1.bf16.msra.mxu0 %v4324_v40 }
 0x17f   : > { %3972 = vmatpush1.bf16.msra.mxu1 %v4324_v40  ;;  %1475 = vmatprep.subr.bf16.mxu0 %v4329_v41 }
 0x180   : > { %3957 = vmatprep.subr.bf16.mxu1 %v4329_v41 }
 0x182   : > { %1476 = vmatpush1.bf16.msra.mxu0 %v4327_v42 }
 0x183   : > { %3973 = vmatpush1.bf16.msra.mxu1 %v4327_v42  ;;  %1477 = vmatprep.subr.bf16.mxu0 %v4332_v43 }
 0x184   : > { %3958 = vmatprep.subr.bf16.mxu1 %v4332_v43  ;;  %1326 = vmatmul.mubr.bf16.gmra.mrb[28].mxu0 %v4287_v44 }
 0x185   : > { %1439 = vmatmul.mubr.bf16.gmra.mrb[28].mxu1 %v4287_v44  ;;  %1481 = vmatprep.mubr.bf16.mxu0 %v5114_v48  ;;  %v633_v48 = vlaneseq }
 0x186   : > { %1521 = vmatprep.mubr.bf16.mxu1 %v5152_v21  ;;  %1478 = vmatpush1.bf16.msra.mxu0 %v4330_v45 }
 0x187   : > { %3974 = vmatpush1.bf16.msra.mxu1 %v4330_v45  ;;  %1479 = vmatprep.subr.bf16.mxu0 %v4335_v46  ;;  %v5184_v49 = vshrl.u32 %v633_v48, 7 }
 0x188   : > { %3959 = vmatprep.subr.bf16.mxu1 %v4335_v46 }
 0x189   : > { %v635_v50 = vsub.s32 0, %v5184_v49  ;;  %v647_v52 = vsub.s32 3, %v5184_v49  ;;  %v643_v54 = vsub.s32 2, %v5184_v49  ;;  %v639_v60 = vsub.s32 1, %v5184_v49 }
 0x18a   : > { %1480 = vmatpush1.bf16.msra.mxu0 %v4333_v47 }
 0x18b   : > { %3975 = vmatpush1.bf16.msra.mxu1 %v4333_v47  ;;  %v5191_v53 = vrot.slane %v5187_v51, %v635_v50  ;;  %v5195_v55 = vrot.slane %v5187_v51, %v647_v52  ;;  %v5201_v59 = vrot.slane %v5187_v51, %v643_v54  ;;  %v5215_v5 = vrot.slane %v5187_v51, %v639_v60 }
 0x18d   : > { %1482 = vmatmul.mubr.bf16.vlgmr.msra.gmra.mrb[32].mxu0 %v5119_v2 }
 0x18e   : > { %1522 = vmatmul.mubr.bf16.vlgmr.msra.gmra.mrb[32].mxu1 %v5159_v26  ;;  %1491 = vmatprep.mubr.bf16.mxu0 %v5122_v3 }
 0x18f   : > { %1531 = vmatprep.mubr.bf16.mxu1 %v5162_v27 }
 0x195   : > { %1492 = vmatmul.mubr.bf16.gmra.mrb[36].mxu0 %v5129_v8 }
 0x196   : > { %1532 = vmatmul.mubr.bf16.gmra.mrb[36].mxu1 %v4281_v32  ;;  %1501 = vmatprep.mubr.bf16.mxu0 %v5132_v9 }
 0x197   : > { %1541 = vmatprep.mubr.bf16.mxu1 %v4282_v33 }
 0x19d   : > { %1502 = vmatmul.mubr.bf16.gmra.mrb[40].mxu0 %v5139_v14 }
 0x19e   : > { %1542 = vmatmul.mubr.bf16.gmra.mrb[40].mxu1 %v4284_v38  ;;  %1511 = vmatprep.mubr.bf16.mxu0 %v5142_v15 }
 0x19f   : > { %1551 = vmatprep.mubr.bf16.mxu1 %v4285_v39 }
 0x1a5   : > { %1512 = vmatmul.mubr.bf16.gmra.mrb[44].mxu0 %v5149_v20 }
 0x1a6   : > { %1552 = vmatmul.mubr.bf16.gmra.mrb[44].mxu1 %v4287_v44 }
 0x21f   : > { %v1257_v56 = vpop.f32.mrb[0].mxu0 }
 0x220   : > { %v1370_v57 = vpop.f32.mrb[0].mxu1  ;;  %v5198_v58 = vadd.f32 %v1257_v56, %v5191_v53  ;;  %v1259_v61 = vpop.f32.mrb[1].mxu0 }
 0x221   : > { %v1372_v62 = vpop.f32.mrb[1].mxu1  ;;  %v1261_v0 = vpop.f32.mrb[2].mxu0  ;;  %v5212_v4 = vadd.f32 %v1370_v57, %v5201_v59  ;;  %v5225_v9 = vadd.f32 %v1259_v61, %v5215_v5 }
 0x222   : > { %v5205_v63 = vadd.f32 %v1372_v62, %v5195_v55  ;;  %v1374_v1 = vpop.f32.mrb[2].mxu1  ;;  %v1263_v2 = vpop.f32.mrb[3].mxu0  ;;  %1738 = vrot.lane.b32.xlu0 %v5198_v58, %s4634_s22  ;;  %v5218_v6 = vadd.f32 %v1261_v0, %v5191_v53 }
 0x223   : > { %v1376_v3 = vpop.f32.mrb[3].mxu1  ;;  %v5228_v12 = vadd.f32 %v1263_v2, %v5215_v5  ;;  %v5235_v17 = vadd.f32 %v1374_v1, %v5201_v59 }
 0x224   : > { %2077 = vrot.lane.b32.xlu1 %v5205_v63, %s4634_s22  ;;  %v5238_v18 = vadd.f32 %v1376_v3, %v5195_v55 }
 0x226   : > { %2075 = vrot.lane.b32.xlu0 %v5212_v4, %s4634_s22 }
 0x227   : > { %v1267_v7 = vpop.f32.mrb[4].mxu0 }
 0x228   : > { %1742 = vrot.lane.b32.xlu1 %v5218_v6, %s4634_s22  ;;  %v1380_v8 = vpop.f32.mrb[4].mxu1  ;;  %v1269_v10 = vpop.f32.mrb[5].mxu0  ;;  %v5241_v19 = vadd.f32 %v1267_v7, %v5191_v53 }
 0x229   : > { %v1382_v11 = vpop.f32.mrb[5].mxu1  ;;  %v1271_v13 = vpop.f32.mrb[6].mxu0  ;;  %v5246_v20 = vadd.f32 %v1269_v10, %v5215_v5  ;;  %v5253_v27 = vadd.f32 %v1380_v8, %v5201_v59 }
 0x22a   : > { %v1384_v14 = vpop.f32.mrb[6].mxu1  ;;  %1740 = vrot.lane.b32.xlu0 %v5225_v9, %s4634_s22  ;;  %v1273_v15 = vpop.f32.mrb[7].mxu0  ;;  %v5260_v30 = vadd.f32 %v1382_v11, %v5195_v55  ;;  %v5271_v33 = vadd.f32 %v1271_v13, %v5191_v53 }
 0x22b   : > { %v1386_v16 = vpop.f32.mrb[7].mxu1  ;;  %v5276_v36 = vadd.f32 %v1273_v15, %v5215_v5  ;;  %v5291_v41 = vadd.f32 %v1384_v14, %v5201_v59 }
 0x22c   : > { %1744 = vrot.lane.b32.xlu1 %v5228_v12, %s4634_s22  ;;  %v5294_v42 = vadd.f32 %v1386_v16, %v5195_v55 }
 0x22e   : > { %2079 = vrot.lane.b32.xlu0 %v5235_v17, %s4634_s22 }
 0x22f   : > { %v1277_v21 = vpop.f32.mrb[8].mxu0 }
 0x230   : > { %2081 = vrot.lane.b32.xlu1 %v5238_v18, %s4634_s22  ;;  %v1390_v22 = vpop.f32.mrb[8].mxu1  ;;  %v1279_v23 = vpop.f32.mrb[9].mxu0  ;;  %v5297_v43 = vadd.f32 %v1277_v21, %v5191_v53 }
 0x231   : > { %v1392_v24 = vpop.f32.mrb[9].mxu1  ;;  %v1281_v25 = vpop.f32.mrb[10].mxu0  ;;  %v5302_v44 = vadd.f32 %v1279_v23, %v5215_v5  ;;  %v5318_v60 = vadd.f32 %v1390_v22, %v5201_v59 }
 0x232   : > { %v5250_v26 = vpop.f32.mrb[10].mxu1  ;;  %1746 = vrot.lane.b32.xlu0 %v5241_v19, %s4634_s22  ;;  %v1283_v28 = vpop.f32.mrb[11].mxu0  ;;  %v5329_v2 = vadd.f32 %v1392_v24, %v5195_v55  ;;  %v5344_v11 = vadd.f32 %v1281_v25, %v5191_v53 }
 0x233   : > { %v5257_v29 = vpop.f32.mrb[11].mxu1  ;;  %6232 = vst [vmem:[#allocation42_spill] sm:$0xff] %v5318_v60  ;;  %v5353_v21 = vadd.f32 %v1283_v28, %v5215_v5 }
 0x234   : > { %1748 = vrot.lane.b32.xlu1 %v5246_v20, %s4634_s22  ;;  %6234 = vst [vmem:[#allocation44_spill] sm:$0xff] %v5329_v2  ;;  %6237 = vst [vmem:[#allocation47_spill] sm:$0xff] %v5344_v11 }
 0x235   : > { %6240 = vst [vmem:[#allocation50_spill] sm:$0xff] %v5353_v21 }
 0x236   : > { %2083 = vrot.lane.b32.xlu0 %v5253_v27, %s4634_s22 }
 0x237   : > { %v1287_v31 = vpop.f32.mrb[12].mxu0 }
 0x238   : > { %2085 = vrot.lane.b32.xlu1 %v5260_v30, %s4634_s22  ;;  %v5268_v32 = vpop.f32.mrb[12].mxu1  ;;  %v1289_v34 = vpop.f32.mrb[13].mxu0 }
 0x239   : > { %v5273_v35 = vpop.f32.mrb[13].mxu1  ;;  %v5278_v37 = vpop.f32.mrb[14].mxu0 }
 0x23a   : > { %v5280_v38 = vpop.f32.mrb[14].mxu1  ;;  %1750 = vrot.lane.b32.xlu0 %v5271_v33, %s4634_s22  ;;  %v5284_v39 = vpop.f32.mrb[15].mxu0 }
 0x23b   : > { %v5286_v40 = vpop.f32.mrb[15].mxu1 }
 0x23c   : > { %1752 = vrot.lane.b32.xlu1 %v5276_v36, %s4634_s22 }
 0x23e   : > { %2087 = vrot.lane.b32.xlu0 %v5291_v41, %s4634_s22 }
 0x23f   : > { %v1297_v45 = vpop.f32.mrb[16].mxu0 }
 0x240   : > { %2089 = vrot.lane.b32.xlu1 %v5294_v42, %s4634_s22  ;;  %v1410_v46 = vpop.f32.mrb[16].mxu1  ;;  %v5307_v47 = vadd.f32 %v1297_v45, %v5191_v53  ;;  %v5309_v48 = vpop.f32.mrb[17].mxu0 }
 0x241   : > { %v5312_v50 = vadd.f32 %v1410_v46, %v5201_v59  ;;  %v1412_v52 = vpop.f32.mrb[17].mxu1  ;;  %v1301_v54 = vpop.f32.mrb[18].mxu0 }
 0x242   : > { %v5315_v56 = vadd.f32 %v1412_v52, %v5195_v55  ;;  %v1414_v57 = vpop.f32.mrb[18].mxu1  ;;  %1754 = vrot.lane.b32.xlu0 %v5297_v43, %s4634_s22  ;;  %v5323_v61 = vadd.f32 %v1301_v54, %v5191_v53  ;;  %v1303_v62 = vpop.f32.mrb[19].mxu0 }
 0x243   : > { %v5326_v0 = vadd.f32 %v1414_v57, %v5201_v59  ;;  %v1416_v1 = vpop.f32.mrb[19].mxu1  ;;  %v5334_v3 = vadd.f32 %v1303_v62, %v5215_v5  ;;  %v5379_v62 = vadd.f32 %v5250_v26, %v5201_v59 }
 0x244   : > { %1756 = vrot.lane.b32.xlu1 %v5302_v44, %s4634_s22  ;;  %v5337_v7 = vadd.f32 %v1416_v1, %v5195_v55  ;;  %v5383_v1 = vadd.f32 %v5257_v29, %v5195_v55 }
 0x245   : > { %6233 = vst [vmem:[#allocation43_spill] sm:$0xff] %v5326_v0  ;;  %6235 = vst [vmem:[#allocation45_spill] sm:$0xff] %v5334_v3 }
 0x246   : > { %6236 = vst [vmem:[#allocation46_spill] sm:$0xff] %v5337_v7  ;;  %2091 = vrot.lane.b32.xlu0 %v5318_v60, %s4634_s22  ;;  %6247 = vst [vmem:[#allocation57_spill] sm:$0xff] %v5379_v62 }
 0x247   : > { %v1307_v8 = vpop.f32.mrb[20].mxu0  ;;  %6248 = vst [vmem:[#allocation58_spill] sm:$0xff] %v5383_v1 }
 0x248   : > { %2093 = vrot.lane.b32.xlu1 %v5329_v2, %s4634_s22  ;;  %v1420_v10 = vpop.f32.mrb[20].mxu1  ;;  %v5347_v13 = vadd.f32 %v1307_v8, %v5191_v53  ;;  %v1309_v14 = vpop.f32.mrb[21].mxu0  ;;  %v5386_v8 = vadd.f32 %v1287_v31, %v5191_v53 }
 0x249   : > { %v5350_v15 = vadd.f32 %v1420_v10, %v5201_v59  ;;  %v1422_v16 = vpop.f32.mrb[21].mxu1  ;;  %v5356_v22 = vadd.f32 %v1309_v14, %v5215_v5  ;;  %v1311_v23 = vpop.f32.mrb[22].mxu0  ;;  %v5391_v10 = vadd.f32 %v1289_v34, %v5215_v5 }
 0x24a   : > { %6238 = vst [vmem:[#allocation48_spill] sm:$0xff] %v5347_v13  ;;  %v5359_v24 = vadd.f32 %v1422_v16, %v5195_v55  ;;  %v1424_v25 = vpop.f32.mrb[22].mxu1  ;;  %1758 = vrot.lane.b32.xlu0 %v5344_v11, %s4634_s22  ;;  %v5364_v45 = vadd.f32 %v1311_v23, %v5191_v53  ;;  %v1313_v46 = vpop.f32.mrb[23].mxu0  ;;  %6249 = vst [vmem:[#allocation59_spill] sm:$0xff] %v5386_v8 }
 0x24b   : > { %6239 = vst [vmem:[#allocation49_spill] sm:$0xff] %v5350_v15  ;;  %6241 = vst [vmem:[#allocation51_spill] sm:$0xff] %v5356_v22  ;;  %v5367_v52 = vadd.f32 %v1424_v25, %v5201_v59  ;;  %v1426_v28 = vpop.f32.mrb[23].mxu1  ;;  %v5372_v54 = vadd.f32 %v1313_v46, %v5215_v5 }
 0x24c   : > { %6242 = vst [vmem:[#allocation52_spill] sm:$0xff] %v5359_v24  ;;  %6243 = vst [vmem:[#allocation53_spill] sm:$0xff] %v5364_v45  ;;  %1760 = vrot.lane.b32.xlu1 %v5353_v21, %s4634_s22  ;;  %v5375_v57 = vadd.f32 %v1426_v28, %v5195_v55 }
 0x24d   : > { %6244 = vst [vmem:[#allocation54_spill] sm:$0xff] %v5367_v52  ;;  %6245 = vst [vmem:[#allocation55_spill] sm:$0xff] %v5372_v54 }
 0x24e   : > { %6246 = vst [vmem:[#allocation56_spill] sm:$0xff] %v5375_v57  ;;  %2095 = vrot.lane.b32.xlu0 %v5379_v62, %s4634_s22  ;;  %6250 = vst [vmem:[#allocation60_spill] sm:$0xff] %v5391_v10 }
 0x24f   : > { %v1317_v14 = vpop.f32.mrb[24].mxu0 }
 0x250   : > { %2097 = vrot.lane.b32.xlu1 %v5383_v1, %s4634_s22  ;;  %v1430_v16 = vpop.f32.mrb[24].mxu1  ;;  %v5396_v26 = vadd.f32 %v1317_v14, %v5191_v53  ;;  %v1319_v23 = vpop.f32.mrb[25].mxu0  ;;  %v5409_v1 = vadd.f32 %v5268_v32, %v5201_v59 }
 0x251   : > { %v5399_v29 = vadd.f32 %v1430_v16, %v5201_v59  ;;  %v1432_v31 = vpop.f32.mrb[25].mxu1  ;;  %v5402_v25 = vadd.f32 %v1319_v23, %v5215_v5  ;;  %v1321_v46 = vpop.f32.mrb[26].mxu0 }
 0x252   : > { %6251 = vst [vmem:[#allocation61_spill] sm:$0xff] %v5396_v26  ;;  %v5405_v34 = vadd.f32 %v1432_v31, %v5195_v55  ;;  %v1434_v28 = vpop.f32.mrb[26].mxu1  ;;  %6255 = vst [vmem:[#allocation65_spill] sm:$0xff] %v5409_v1  ;;  %1762 = vrot.lane.b32.xlu0 %v5386_v8, %s4634_s22  ;;  %v5414_v14 = vadd.f32 %v1321_v46, %v5191_v53  ;;  %v1323_v16 = vpop.f32.mrb[27].mxu0  ;;  %v5421_v31 = vadd.f32 %v5273_v35, %v5195_v55 }
 0x253   : > { %6252 = vst [vmem:[#allocation62_spill] sm:$0xff] %v5399_v29  ;;  %6253 = vst [vmem:[#allocation63_spill] sm:$0xff] %v5402_v25  ;;  %v5417_v21 = vadd.f32 %v1434_v28, %v5201_v59  ;;  %v1436_v23 = vpop.f32.mrb[27].mxu1  ;;  %v5426_v32 = vadd.f32 %v1323_v16, %v5215_v5  ;;  %v5437_v35 = vadd.f32 %v5278_v37, %v5191_v53 }
 0x254   : > { %6254 = vst [vmem:[#allocation64_spill] sm:$0xff] %v5405_v34  ;;  %6256 = vst [vmem:[#allocation66_spill] sm:$0xff] %v5414_v14  ;;  %1764 = vrot.lane.b32.xlu1 %v5391_v10, %s4634_s22  ;;  %v5429_v8 = vadd.f32 %v1436_v23, %v5195_v55 }
 0x255   : > { %6257 = vst [vmem:[#allocation67_spill] sm:$0xff] %v5417_v21  ;;  %6258 = vst [vmem:[#allocation68_spill] sm:$0xff] %v5421_v31 }
 0x256   : > { %6259 = vst [vmem:[#allocation69_spill] sm:$0xff] %v5426_v32  ;;  %6260 = vst [vmem:[#allocation70_spill] sm:$0xff] %v5429_v8  ;;  %2099 = vrot.lane.b32.xlu0 %v5409_v1, %s4634_s22  ;;  %v5447_v1 = vadd.f32 %v5284_v39, %v5215_v5 }
 0x257   : > { %v1327_v46 = vpop.f32.mrb[28].mxu0  ;;  %6261 = vst [vmem:[#allocation71_spill] sm:$0xff] %v5437_v35 }
 0x258   : > { %2101 = vrot.lane.b32.xlu1 %v5421_v31, %s4634_s22  ;;  %v1440_v28 = vpop.f32.mrb[28].mxu1  ;;  %v5440_v10 = vadd.f32 %v1327_v46, %v5191_v53  ;;  %v1329_v16 = vpop.f32.mrb[29].mxu0 }
 0x259   : > { %v5443_v62 = vadd.f32 %v1440_v28, %v5201_v59  ;;  %v1442_v23 = vpop.f32.mrb[29].mxu1  ;;  %v5450_v31 = vadd.f32 %v1329_v16, %v5215_v5  ;;  %v1331_v11 = vpop.f32.mrb[30].mxu0 }
 0x25a   : > { %6262 = vst [vmem:[#allocation72_spill] sm:$0xff] %v5440_v10  ;;  %v5453_v2 = vadd.f32 %v1442_v23, %v5195_v55  ;;  %v1444_v37 = vpop.f32.mrb[30].mxu1  ;;  %1766 = vrot.lane.b32.xlu0 %v5437_v35, %s4634_s22  ;;  %v5458_v46 = vadd.f32 %v1331_v11, %v5191_v53  ;;  %v1333_v28 = vpop.f32.mrb[31].mxu0  ;;  %v5473_v35 = vadd.f32 %v5280_v38, %v5201_v59  ;;  %v655_v38 = vsub.s32 5, %v5184_v49 }
 0x25b   : > { %6263 = vst [vmem:[#allocation73_spill] sm:$0xff] %v5443_v62  ;;  %6264 = vst [vmem:[#allocation74_spill] sm:$0xff] %v5450_v31  ;;  %v5461_v60 = vadd.f32 %v1444_v37, %v5201_v59  ;;  %v1446_v39 = vpop.f32.mrb[31].mxu1  ;;  %v5466_v16 = vadd.f32 %v1333_v28, %v5215_v5  ;;  %v5477_v53 = vadd.f32 %v5286_v40, %v5195_v55 }
 0x25c   : > { %6265 = vst [vmem:[#allocation75_spill] sm:$0xff] %v5453_v2  ;;  %1768 = vrot.lane.b32.xlu1 %v5447_v1, %s4634_s22  ;;  %v5469_v23 = vadd.f32 %v1446_v39, %v5195_v55  ;;  %v5483_v11 = vadd.f32 %v5309_v48, %v5215_v5  ;;  %v651_v55 = vsub.s32 4, %v5184_v49  ;;  %v5521_v28 = vrot.slane %v5187_v51, %v655_v38 }
 0x25e   : > { %6266 = vst [vmem:[#allocation76_spill] sm:$0xff] %v5469_v23  ;;  %2103 = vrot.lane.b32.xlu0 %v5473_v35, %s4634_s22  ;;  %v5518_v37 = vrot.slane %v5187_v51, %v651_v55 }
 0x260   : > { %2105 = vrot.lane.b32.xlu1 %v5477_v53, %s4634_s22  ;;  %v1483_v59 = vpop.f32.mrb[32].mxu0 }
 0x261   : > { %v1523_v5 = vpop.f32.mrb[32].mxu1  ;;  %v1485_v40 = vpop.f32.mrb[33].mxu0  ;;  %v1484_v49 = vadd.f32 %v1483_v59, %v5518_v37 }
 0x262   : > { %1770 = vrot.lane.b32.xlu0 %v5307_v47, %s4634_s22  ;;  %v1525_v48 = vpop.f32.mrb[33].mxu1  ;;  %v1487_v39 = vpop.f32.mrb[34].mxu0 }
 0x263   : > { %v1526_v55 = vadd.f32 %v1525_v48, %v5521_v28  ;;  %v1488_v51 = vadd.f32 %v1487_v39, %v5518_v37 }
 0x264   : > { %1772 = vrot.lane.b32.xlu1 %v5483_v11, %s4634_s22 }
 0x266   : > { %2107 = vrot.lane.b32.xlu0 %v5312_v50, %s4634_s22 }
 0x268   : > { %2109 = vrot.lane.b32.xlu1 %v5315_v56, %s4634_s22 }
 0x26a   : > { %1774 = vrot.lane.b32.xlu0 %v5323_v61, %s4634_s22 }
 0x26c   : > { %1776 = vrot.lane.b32.xlu1 %v5334_v3, %s4634_s22 }
 0x26e   : > { %2111 = vrot.lane.b32.xlu0 %v5326_v0, %s4634_s22 }
 0x270   : > { %2113 = vrot.lane.b32.xlu1 %v5337_v7, %s4634_s22  ;;  %v3742_v7 = vpack.c.bf16 %v1488_v51, %v1484_v49 }
 0x272   : > { %1778 = vrot.lane.b32.xlu0 %v5347_v13, %s4634_s22  ;;  %3743 = vst [vmem:[%s5540_s8] sm:$0xff] %v3742_v7  }
 0x274   : > { %1780 = vrot.lane.b32.xlu1 %v5356_v22, %s4634_s22  ;;  %v1524_v22 = vadd.f32 %v1523_v5, %v5518_v37 }
 0x276   : > { %2115 = vrot.lane.b32.xlu0 %v5350_v15, %s4634_s22 }
 0x278   : > { %2117 = vrot.lane.b32.xlu1 %v5359_v24, %s4634_s22  ;;  %v1527_v24 = vpop.f32.mrb[34].mxu1 }
 0x279   : > { %v1529_v15 = vpop.f32.mrb[35].mxu1  ;;  %v1528_v38 = vadd.f32 %v1527_v24, %v5518_v37 }
 0x27a   : > { %1782 = vrot.lane.b32.xlu0 %v5364_v45, %s4634_s22  ;;  %v1489_v45 = vpop.f32.mrb[35].mxu0  ;;  %v1533_v48 = vpop.f32.mrb[36].mxu1 }
 0x27b   : > { %v1490_v13 = vadd.f32 %v1489_v45, %v5521_v28  ;;  %v3762_v59 = vpack.c.bf16 %v1528_v38, %v1524_v22  ;;  %v1534_v39 = vadd.f32 %v1533_v48, %v5518_v37 }
 0x27c   : > { %1784 = vrot.lane.b32.xlu1 %v5372_v54, %s4634_s22  ;;  %v1486_v54 = vadd.f32 %v1485_v40, %v5521_v28  ;;  %v1493_v40 = vpop.f32.mrb[36].mxu0 }
 0x27d   : > { %3916 = vst [vmem:[%s5540_s8 + $0x20] sm:$0xff] %v3762_v59  }
 0x27e   : > { %2119 = vrot.lane.b32.xlu0 %v5367_v52, %s4634_s22  ;;  %v1530_v52 = vadd.f32 %v1529_v15, %v5521_v28  ;;  %v3862_v3 = vpack.c.bf16 %v1490_v13, %v1486_v54  ;;  %v1495_v13 = vpop.f32.mrb[37].mxu0  ;;  %v1535_v15 = vpop.f32.mrb[37].mxu1  ;;  %v1494_v54 = vadd.f32 %v1493_v40, %v5518_v37 }
 0x27f   : > { %v1497_v22 = vpop.f32.mrb[38].mxu0  ;;  %v1537_v24 = vpop.f32.mrb[38].mxu1  ;;  %v1496_v49 = vadd.f32 %v1495_v13, %v5521_v28 }
 0x280   : > { %2121 = vrot.lane.b32.xlu1 %v5375_v57, %s4634_s22  ;;  %v3882_v5 = vpack.c.bf16 %v1530_v52, %v1526_v55  ;;  %3936 = vst [vmem:[%s5540_s8 + $0x40] sm:$0xff] %v3862_v3   ;;  %v1499_v45 = vpop.f32.mrb[39].mxu0  ;;  %v1539_v52 = vpop.f32.mrb[39].mxu1  ;;  %v1536_v3 = vadd.f32 %v1535_v15, %v5521_v28  ;;  %v1498_v7 = vadd.f32 %v1497_v22, %v5518_v37 }
 0x281   : > { %v1538_v55 = vadd.f32 %v1537_v24, %v5518_v37  ;;  %v1500_v51 = vadd.f32 %v1499_v45, %v5521_v28  ;;  %v1540_v38 = vadd.f32 %v1539_v52, %v5521_v28  ;;  %v1503_v13 = vpop.f32.mrb[40].mxu0  ;;  %v1543_v15 = vpop.f32.mrb[40].mxu1 }
 0x282   : > { %1786 = vrot.lane.b32.xlu0 %v5396_v26, %s4634_s22  ;;  %3940 = vst [vmem:[%s5540_s8 + $0x60] sm:$0xff] %v3882_v5   ;;  %v3747_v59 = vpack.c.bf16 %v1498_v7, %v1494_v54  ;;  %v1505_v22 = vpop.f32.mrb[41].mxu0  ;;  %v1545_v24 = vpop.f32.mrb[41].mxu1  ;;  %v1504_v45 = vadd.f32 %v1503_v13, %v5518_v37  ;;  %v1544_v52 = vadd.f32 %v1543_v15, %v5518_v37 }
 0x283   : > { %v3767_v5 = vpack.c.bf16 %v1538_v55, %v1534_v39  ;;  %v3867_v40 = vpack.c.bf16 %v1500_v51, %v1496_v49  ;;  %v3887_v48 = vpack.c.bf16 %v1540_v38, %v1536_v3  ;;  %v1506_v54 = vadd.f32 %v1505_v22, %v5521_v28  ;;  %v1507_v49 = vpop.f32.mrb[42].mxu0  ;;  %v1547_v3 = vpop.f32.mrb[42].mxu1 }
 0x284   : > { %1788 = vrot.lane.b32.xlu1 %v5402_v25, %s4634_s22  ;;  %3913 = vst [vmem:[%s5540_s8 + $0x8] sm:$0xff] %v3747_v59   ;;  %v1546_v39 = vadd.f32 %v1545_v24, %v5521_v28  ;;  %v1509_v7 = vpop.f32.mrb[43].mxu0  ;;  %v1549_v55 = vpop.f32.mrb[43].mxu1  ;;  %v1508_v51 = vadd.f32 %v1507_v49, %v5518_v37  ;;  %v1548_v38 = vadd.f32 %v1547_v3, %v5518_v37  ;;  %v5582_v24 = vld [vmem:[%s5099_s17 + $0x8] sm:$0xff]  ;;  %v5585_v49 = vld [vmem:[%s5099_s17 + $0x10] sm:$0xff] }
 0x285   : > { %3917 = vst [vmem:[%s5540_s8 + $0x28] sm:$0xff] %v3767_v5   ;;  %3937 = vst [vmem:[%s5540_s8 + $0x48] sm:$0xff] %v3867_v40   ;;  %v1510_v59 = vadd.f32 %v1509_v7, %v5521_v28  ;;  %v1550_v5 = vadd.f32 %v1549_v55, %v5521_v28  ;;  %v5579_v40 = vld [vmem:[%s5099_s17] sm:$0xff]  ;;  %v1513_v3 = vpop.f32.mrb[44].mxu0  ;;  %v1553_v7 = vpop.f32.mrb[44].mxu1  ;;  %v1580_v55 = vunpack.c.l.bf16 %v5582_v24 }
 0x286   : > { %2123 = vrot.lane.b32.xlu0 %v5399_v29, %s4634_s22  ;;  %3941 = vst [vmem:[%s5540_s8 + $0x68] sm:$0xff] %v3887_v48   ;;  %v3752_v48 = vpack.c.bf16 %v1508_v51, %v1504_v45  ;;  %v3772_v13 = vpack.c.bf16 %v1548_v38, %v1544_v52  ;;  %v1578_v45 = vunpack.c.l.bf16 %v5579_v40  ;;  %v1515_v52 = vpop.f32.mrb[45].mxu0  ;;  %v1581_v51 = vunpack.c.h.bf16 %v5582_v24  ;;  %v5613_v24 = vld [vmem:[%s5105_s20 + $0x8] sm:$0xff] }
 0x287   : > { %v3872_v15 = vpack.c.bf16 %v1510_v59, %v1506_v54  ;;  %v3892_v22 = vpack.c.bf16 %v1550_v5, %v1546_v39  ;;  %v1555_v54 = vpop.f32.mrb[45].mxu1  ;;  %v1579_v39 = vunpack.c.h.bf16 %v5579_v40  ;;  %v1517_v5 = vpop.f32.mrb[46].mxu0  ;;  %v1514_v38 = vadd.f32 %v1513_v3, %v5518_v37 }
 0x288   : > { %2125 = vrot.lane.b32.xlu1 %v5405_v34, %s4634_s22  ;;  %3914 = vst [vmem:[%s5540_s8 + $0x10] sm:$0xff] %v3752_v48   ;;  %3918 = vst [vmem:[%s5540_s8 + $0x30] sm:$0xff] %v3772_v13   ;;  %v1557_v40 = vpop.f32.mrb[46].mxu1  ;;  %v1554_v48 = vadd.f32 %v1553_v7, %v5518_v37  ;;  %v1516_v13 = vadd.f32 %v1515_v52, %v5521_v28  ;;  %v1518_v34 = vadd.f32 %v1517_v5, %v5518_v37 }
 0x289   : > { %3938 = vst [vmem:[%s5540_s8 + $0x50] sm:$0xff] %v3872_v15   ;;  %3942 = vst [vmem:[%s5540_s8 + $0x70] sm:$0xff] %v3892_v22   ;;  %v1519_v15 = vpop.f32.mrb[47].mxu0  ;;  %v1628_v57 = vunpack.c.l.bf16 %v5613_v24  ;;  %v1629_v5 = vunpack.c.h.bf16 %v5613_v24 }
 0x28a   : > { %1790 = vrot.lane.b32.xlu0 %v5414_v14, %s4634_s22  ;;  %v5622_v14 = vld [vmem:[%s5107_s7 + $0x8] sm:$0xff]  ;;  %v1520_v29 = vadd.f32 %v1519_v15, %v5521_v28  ;;  %v3757_v0 = vpack.c.bf16 %v1518_v34, %v1514_v38  ;;  %v1883_v15 = vmul.f32 %v1578_v45, %v5198_v58  ;;  %v2220_v34 = vmul.f32 %v1579_v39, %v5205_v63 }
 0x28c   : > { %1792 = vrot.lane.b32.xlu1 %v5426_v32, %s4634_s22  ;;  %v5588_v32 = vld [vmem:[%s5099_s17 + $0x18] sm:$0xff]  ;;  %3915 = vst [vmem:[%s5540_s8 + $0x18] sm:$0xff] %v3757_v0   ;;  %v3877_v58 = vpack.c.bf16 %v1520_v29, %v1516_v13 }
 0x28e   : > { %2127 = vrot.lane.b32.xlu0 %v5417_v21, %s4634_s22  ;;  %v1559_v21 = vpop.f32.mrb[47].mxu1  ;;  %3939 = vst [vmem:[%s5540_s8 + $0x58] sm:$0xff] %v3877_v58  }
 0x28f   : > { %v1560_v3 = vadd.f32 %v1559_v21, %v5521_v28  ;;  %v2219_v21 = vmul.f32 %v1578_v45, %v5212_v4  ;;  %v2221_v45 = vmul.f32 %v1580_v55, %v5235_v17 }
 0x290   : > { %2129 = vrot.lane.b32.xlu1 %v5429_v8, %s4634_s22  ;;  %v1556_v8 = vadd.f32 %v1555_v54, %v5521_v28  ;;  %v1677_v28 = vunpack.c.h.bf16 %v5622_v14 }
 0x292   : > { %1794 = vrot.lane.b32.xlu0 %v5440_v10, %s4634_s22  ;;  %v5608_v10 = vld [vmem:[%s5107_s7] sm:$0xff]  ;;  %v3897_v4 = vpack.c.bf16 %v1560_v3, %v1556_v8 }
 0x293   : > { %v6173_v52 = vunpack.c.l.bf16 %v5608_v10  ;;  %v6267_v17 = vunpack.c.h.bf16 %v5608_v10 }
 0x294   : > { %1796 = vrot.lane.b32.xlu1 %v5450_v31, %s4634_s22  ;;  %v1739_v59 = vpop.permute.xlu0 %1738  ;;  %v1610_v31 = vld [vmem:[%s5105_s20] sm:$0xff]  ;;  %3943 = vst [vmem:[%s5540_s8 + $0x78] sm:$0xff] %v3897_v4   ;;  %v6268_v4 = vunpack.c.l.bf16 %v5608_v10 }
 0x295   : > { %v1626_v7 = vunpack.c.l.bf16 %v1610_v31  ;;  %v1627_v25 = vunpack.c.h.bf16 %v1610_v31  ;;  %v1676_v31 = vunpack.c.l.bf16 %v5622_v14  ;;  %v1885_v14 = vmul.f32 %v1580_v55, %v5218_v6  ;;  %v5657_v6 = vld [vmem:[%s5105_s20 + $0x10] sm:$0xff] }
 0x296   : > { %v2078_v22 = vpop.permute.xlu1 %2077  ;;  %2131 = vrot.lane.b32.xlu0 %v5443_v62, %s4634_s22  ;;  %v1558_v62 = vadd.f32 %v1557_v40, %v5518_v37 }
 0x298   : > { %2133 = vrot.lane.b32.xlu1 %v5453_v2, %s4634_s22  ;;  %v2076_v26 = vpop.permute.xlu0 %2075  ;;  %v3777_v37 = vpack.c.bf16 %v1558_v62, %v1554_v48  ;;  %v1884_v62 = vmul.f32 %v1579_v39, %v5225_v9  ;;  %v2222_v48 = vmul.f32 %v1581_v51, %v5238_v18 }
 0x299   : > { %v2139_v40 = vsel %vm1802_vm0, %v2076_v26, %v2078_v22  ;;  %v2203_v54 = vsel %vm1802_vm0, %v2078_v22, %v2076_v26  ;;  %v1886_v26 = vmul.f32 %v1581_v51, %v5228_v12 }
 0x29a   : > { %v1743_v2 = vpop.permute.xlu1 %1742  ;;  %1798 = vrot.lane.b32.xlu0 %v5458_v46, %s4634_s22  ;;  %3919 = vst [vmem:[%s5540_s8 + $0x38] sm:$0xff] %v3777_v37   ;;  %v2251_v9 = vmul.f32 %v2139_v40, %v1626_v7  ;;  %v2252_v8 = vmul.f32 %v2203_v54, %v1627_v25 }
 0x29c   : > { %1800 = vrot.lane.b32.xlu1 %v5466_v16, %s4634_s22  ;;  %v1741_v38 = vpop.permute.xlu0 %1740 }
 0x29d   : > { %v1803_v22 = vsel %vm1802_vm0, %v1739_v59, %v1741_v38  ;;  %v1867_v0 = vsel %vm1802_vm0, %v1741_v38, %v1739_v59  ;;  %v2315_v38 = vmul.f32 %v2203_v54, %v6268_v4  ;;  %v6270_v54 = vunpack.c.l.bf16 %v5657_v6 }
 0x29e   : > { %v1745_v29 = vpop.permute.xlu1 %1744  ;;  %v1915_v63 = vmul.f32 %v1803_v22, %v1626_v7  ;;  %v1916_v39 = vmul.f32 %v1867_v0, %v1627_v25  ;;  %2135 = vrot.lane.b32.xlu0 %v5461_v60, %s4634_s22  ;;  %v1979_v12 = vmul.f32 %v1867_v0, %v6173_v52  ;;  %v1980_v18 = vmul.f32 %v1803_v22, %v6267_v17 }
 0x29f   : > { %v1804_v55 = vsel %vm1802_vm0, %v1743_v2, %v1745_v29  ;;  %v1868_v51 = vsel %vm1802_vm0, %v1745_v29, %v1743_v2  ;;  %v2283_v2 = vadd.f32 %v2251_v9, %v2219_v21  ;;  %v2284_v29 = vadd.f32 %v2252_v8, %v2220_v34 }
 0x2a0   : > { %2137 = vrot.lane.b32.xlu1 %v5469_v23, %s4634_s22  ;;  %v1947_v59 = vadd.f32 %v1915_v63, %v1883_v15  ;;  %v1948_v25 = vadd.f32 %v1916_v39, %v1884_v62  ;;  %v1917_v13 = vmul.f32 %v1804_v55, %v1628_v57  ;;  %v1918_v24 = vmul.f32 %v1868_v51, %v1629_v5  ;;  %v2080_v3 = vpop.permute.xlu0 %2079 }
 0x2a1   : > { %v1981_v7 = vmul.f32 %v1868_v51, %v1676_v31  ;;  %v1982_v37 = vmul.f32 %v1804_v55, %v1677_v28 }
 0x2a2   : > { %v2082_v58 = vpop.permute.xlu1 %2081  ;;  %v2011_v22 = vadd.f32 %v1979_v12, %v1947_v59  ;;  %v2012_v0 = vadd.f32 %v1980_v18, %v1948_v25  ;;  %v1949_v17 = vadd.f32 %v1917_v13, %v1885_v14  ;;  %v1950_v52 = vadd.f32 %v1918_v24, %v1886_v26  ;;  %v5676_v25 = vld [vmem:[%s5107_s7 + $0x10] sm:$0xff] }
 0x2a3   : > { %v2140_v23 = vsel %vm1802_vm0, %v2080_v3, %v2082_v58  ;;  %v2204_v15 = vsel %vm1802_vm0, %v2082_v58, %v2080_v3  ;;  %v6269_v12 = vunpack.c.h.bf16 %v5608_v10  ;;  %v6272_v24 = vunpack.c.l.bf16 %v5585_v49 }
 0x2a4   : > { %v2013_v62 = vadd.f32 %v1981_v7, %v1949_v17  ;;  %v2014_v63 = vadd.f32 %v1982_v37, %v1950_v52  ;;  %v2253_v39 = vmul.f32 %v2140_v23, %v1628_v57  ;;  %v2254_v55 = vmul.f32 %v2204_v15, %v1629_v5  ;;  %v1747_v51 = vpop.permute.xlu0 %1746 }
 0x2a5   : > { %v2316_v14 = vmul.f32 %v2139_v40, %v6269_v12  ;;  %v2317_v26 = vmul.f32 %v2204_v15, %v1676_v31  ;;  %v2318_v21 = vmul.f32 %v2140_v23, %v1677_v28  ;;  %v2347_v57 = vadd.f32 %v2315_v38, %v2283_v2  ;;  %v1661_v15 = vld [vmem:[%s5107_s7 + $0x18] sm:$0xff] }
 0x2a6   : > { %v1749_v34 = vpop.permute.xlu1 %1748  ;;  %v3662_v9 = vpack.c.bf16 %v2013_v62, %v2011_v22  ;;  %v3782_v8 = vpack.c.bf16 %v2014_v63, %v2012_v0  ;;  %v2285_v18 = vadd.f32 %v2253_v39, %v2221_v45  ;;  %v2286_v59 = vadd.f32 %v2254_v55, %v2222_v48  ;;  %v1613_v48 = vld [vmem:[%s5105_s20 + $0x18] sm:$0xff] }
 0x2a7   : > { %v2348_v52 = vadd.f32 %v2316_v14, %v2284_v29  ;;  %v1805_v5 = vsel %vm1802_vm0, %v1747_v51, %v1749_v34  ;;  %v1869_v13 = vsel %vm1802_vm0, %v1749_v34, %v1747_v51  ;;  %v6271_v28 = vunpack.c.h.bf16 %v5657_v6 }
 0x2a8   : > { %3663 = vst [vmem:[%s5681_s28] sm:$0xff] %v3662_v9   ;;  %3920 = vst [vmem:[%s5681_s28 + $0x40] sm:$0xff] %v3782_v8   ;;  %v2349_v10 = vadd.f32 %v2317_v26, %v2285_v18  ;;  %v2350_v23 = vadd.f32 %v2318_v21, %v2286_v59  ;;  %v1919_v31 = vmul.f32 %v1805_v5, %v6270_v54  ;;  %v2084_v45 = vpop.permute.xlu0 %2083  ;;  %v6273_v7 = vmov %v6272_v24  ;;  %v5719_v18 = vld [vmem:[%s5105_s20 + $0x20] sm:$0xff] }
 0x2a9   : > { %v1920_v40 = vmul.f32 %v1869_v13, %v6271_v28  ;;  %v1887_v3 = vmul.f32 %v6272_v24, %v5241_v19  ;;  %v2223_v37 = vmul.f32 %v6273_v7, %v5253_v27  ;;  %v1678_v58 = vunpack.c.l.bf16 %v5676_v25 }
 0x2aa   : > { %v1679_v4 = vunpack.c.h.bf16 %v5676_v25  ;;  %v2086_v38 = vpop.permute.xlu1 %2085  ;;  %v6274_v22 = vunpack.c.h.bf16 %v5585_v49  ;;  %v3702_v29 = vpack.c.bf16 %v2349_v10, %v2347_v57  ;;  %v3822_v19 = vpack.c.bf16 %v2350_v23, %v2348_v52 }
 0x2ab   : > { %v2141_v62 = vsel %vm1802_vm0, %v2084_v45, %v2086_v38  ;;  %v2205_v27 = vsel %vm1802_vm0, %v2086_v38, %v2084_v45  ;;  %v1632_v63 = vunpack.c.l.bf16 %v1613_v48  ;;  %v1633_v39 = vunpack.c.h.bf16 %v1613_v48 }
 0x2ac   : > { %v1888_v0 = vmul.f32 %v6274_v22, %v5246_v20  ;;  %v6275_v17 = vmov %v6274_v22  ;;  %v6276_v55 = vunpack.c.l.bf16 %v5588_v32  ;;  %3703 = vst [vmem:[%s5714_s19] sm:$0xff] %v3702_v29   ;;  %3928 = vst [vmem:[%s5714_s19 + $0x40] sm:$0xff] %v3822_v19   ;;  %v1751_v14 = vpop.permute.xlu0 %1750  ;;  %v1983_v26 = vmul.f32 %v1869_v13, %v1678_v58 }
 0x2ad   : > { %v2224_v2 = vmul.f32 %v6275_v17, %v5260_v30  ;;  %v1951_v30 = vadd.f32 %v1919_v31, %v1887_v3  ;;  %v1984_v21 = vmul.f32 %v1805_v5, %v1679_v4  ;;  %v1680_v34 = vunpack.c.l.bf16 %v1661_v15  ;;  %v1566_v17 = vld [vmem:[%s5099_s17 + $0x20] sm:$0xff] }
 0x2ae   : > { %v1889_v51 = vmul.f32 %v6276_v55, %v5271_v33  ;;  %v6277_v20 = vmov %v6276_v55  ;;  %v1952_v49 = vadd.f32 %v1920_v40, %v1888_v0  ;;  %v1681_v9 = vunpack.c.h.bf16 %v1661_v15  ;;  %v1753_v8 = vpop.permute.xlu1 %1752 }
 0x2af   : > { %v2225_v12 = vmul.f32 %v6277_v20, %v5291_v41  ;;  %v6278_v33 = vmov %v6270_v54  ;;  %v6279_v41 = vmov %v6271_v28  ;;  %v1806_v57 = vsel %vm1802_vm0, %v1751_v14, %v1753_v8 }
 0x2b0   : > { %v2255_v59 = vmul.f32 %v2141_v62, %v6278_v33  ;;  %v2256_v25 = vmul.f32 %v2205_v27, %v6279_v41  ;;  %v1870_v52 = vsel %vm1802_vm0, %v1753_v8, %v1751_v14  ;;  %v6280_v10 = vunpack.c.h.bf16 %v5588_v32  ;;  %v2088_v45 = vpop.permute.xlu0 %2087 }
 0x2b1   : > { %v1921_v54 = vmul.f32 %v1806_v57, %v1632_v63  ;;  %v1922_v31 = vmul.f32 %v1870_v52, %v1633_v39  ;;  %v2015_v28 = vadd.f32 %v1983_v26, %v1951_v30  ;;  %v2016_v40 = vadd.f32 %v1984_v21, %v1952_v49  ;;  %v1567_v26 = vld [vmem:[%s5099_s17 + $0x28] sm:$0xff] }
 0x2b2   : > { %v1890_v13 = vmul.f32 %v6280_v10, %v5276_v36  ;;  %v6281_v5 = vmov %v6280_v10  ;;  %v1634_v6 = vunpack.c.l.bf16 %v5719_v18  ;;  %v1635_v48 = vunpack.c.h.bf16 %v5719_v18  ;;  %v2090_v36 = vpop.permute.xlu1 %2089  ;;  %v1615_v10 = vld [vmem:[%s5105_s20 + $0x28] sm:$0xff] }
 0x2b3   : > { %v2226_v23 = vmul.f32 %v6281_v5, %v5294_v42  ;;  %v1953_v24 = vadd.f32 %v1921_v54, %v1889_v51  ;;  %v1985_v7 = vmul.f32 %v1870_v52, %v1680_v34  ;;  %v1986_v38 = vmul.f32 %v1806_v57, %v1681_v9 }
 0x2b4   : > { %v1954_v3 = vadd.f32 %v1922_v31, %v1890_v13  ;;  %v2287_v22 = vadd.f32 %v2255_v59, %v2223_v37  ;;  %v2288_v0 = vadd.f32 %v2256_v25, %v2224_v2  ;;  %v2142_v42 = vsel %vm1802_vm0, %v2088_v45, %v2090_v36  ;;  %v1755_v14 = vpop.permute.xlu0 %1754  ;;  %v5740_v25 = vld [vmem:[%s5107_s7 + $0x20] sm:$0xff] }
 0x2b5   : > { %v2206_v32 = vsel %vm1802_vm0, %v2090_v36, %v2088_v45  ;;  %v2017_v29 = vadd.f32 %v1985_v7, %v1953_v24  ;;  %v2257_v15 = vmul.f32 %v2142_v42, %v1632_v63  ;;  %v2319_v20 = vmul.f32 %v2205_v27, %v1678_v58  ;;  %v6282_v45 = vld [vmem:[#allocation42_spill] sm:$0xff] }
 0x2b6   : > { %v2018_v19 = vadd.f32 %v1986_v38, %v1954_v3  ;;  %v2258_v55 = vmul.f32 %v2206_v32, %v1633_v39  ;;  %v2320_v30 = vmul.f32 %v2141_v62, %v1679_v4  ;;  %v2321_v51 = vmul.f32 %v2206_v32, %v1680_v34  ;;  %v1757_v33 = vpop.permute.xlu1 %1756  ;;  %v6283_v3 = vld [vmem:[#allocation44_spill] sm:$0xff]  ;;  %v1663_v38 = vld [vmem:[%s5107_s7 + $0x28] sm:$0xff] }
 0x2b7   : > { %v2322_v49 = vmul.f32 %v2142_v42, %v1681_v9  ;;  %v3667_v37 = vpack.c.bf16 %v2017_v29, %v2015_v28  ;;  %v2289_v21 = vadd.f32 %v2257_v15, %v2225_v12  ;;  %v1586_v59 = vunpack.c.l.bf16 %v1566_v17  ;;  %v6284_v32 = vld [vmem:[#allocation47_spill] sm:$0xff]  ;;  %v6285_v29 = vld [vmem:[#allocation57_spill] sm:$0xff] }
 0x2b8   : > { %v3787_v2 = vpack.c.bf16 %v2018_v19, %v2016_v40  ;;  %v2290_v8 = vadd.f32 %v2258_v55, %v2226_v23  ;;  %v1587_v41 = vunpack.c.h.bf16 %v1566_v17  ;;  %v1807_v63 = vsel %vm1802_vm0, %v1755_v14, %v1757_v33  ;;  %v2092_v52 = vpop.permute.xlu0 %2091 }
 0x2b9   : > { %v1871_v58 = vsel %vm1802_vm0, %v1757_v33, %v1755_v14  ;;  %v2351_v4 = vadd.f32 %v2319_v20, %v2287_v22  ;;  %v2352_v62 = vadd.f32 %v2320_v30, %v2288_v0  ;;  %3899 = vst [vmem:[%s5681_s28 + $0x8] sm:$0xff] %v3667_v37   ;;  %v2353_v27 = vadd.f32 %v2321_v51, %v2289_v21  ;;  %v5765_v14 = vld [vmem:[%s5105_s20 + $0x30] sm:$0xff] }
 0x2ba   : > { %3921 = vst [vmem:[%s5681_s28 + $0x48] sm:$0xff] %v3787_v2   ;;  %v2354_v39 = vadd.f32 %v2322_v49, %v2290_v8  ;;  %v1588_v34 = vunpack.c.l.bf16 %v1567_v26  ;;  %v1589_v12 = vunpack.c.h.bf16 %v1567_v26  ;;  %v1923_v9 = vmul.f32 %v1807_v63, %v1634_v6  ;;  %v2094_v31 = vpop.permute.xlu1 %2093  ;;  %v6286_v8 = vld [vmem:[#allocation50_spill] sm:$0xff] }
 0x2bb   : > { %v1924_v57 = vmul.f32 %v1871_v58, %v1635_v48  ;;  %v3707_v13 = vpack.c.bf16 %v2353_v27, %v2351_v4  ;;  %v1682_v23 = vunpack.c.l.bf16 %v5740_v25  ;;  %v1683_v54 = vunpack.c.h.bf16 %v5740_v25 }
 0x2bc   : > { %v3827_v5 = vpack.c.bf16 %v2354_v39, %v2352_v62  ;;  %v1891_v28 = vmul.f32 %v1586_v59, %v5297_v43  ;;  %v1892_v40 = vmul.f32 %v1587_v41, %v5302_v44  ;;  %v2227_v24 = vmul.f32 %v1586_v59, %v6282_v45  ;;  %v1759_v15 = vpop.permute.xlu0 %1758  ;;  %v6287_v59 = vld [vmem:[#allocation58_spill] sm:$0xff] }
 0x2bd   : > { %v2228_v7 = vmul.f32 %v1587_v41, %v6283_v3  ;;  %3906 = vst [vmem:[%s5714_s19 + $0x8] sm:$0xff] %v3707_v13   ;;  %v2143_v36 = vsel %vm1802_vm0, %v2092_v52, %v2094_v31  ;;  %v2207_v22 = vsel %vm1802_vm0, %v2094_v31, %v2092_v52  ;;  %v1636_v0 = vunpack.c.l.bf16 %v1615_v10  ;;  %v1568_v13 = vld [vmem:[%s5099_s17 + $0x30] sm:$0xff] }
 0x2be   : > { %3929 = vst [vmem:[%s5714_s19 + $0x48] sm:$0xff] %v3827_v5   ;;  %v1637_v42 = vunpack.c.h.bf16 %v1615_v10  ;;  %v1893_v17 = vmul.f32 %v1588_v34, %v6284_v32  ;;  %v2229_v43 = vmul.f32 %v1588_v34, %v6285_v29  ;;  %v1955_v19 = vadd.f32 %v1923_v9, %v1891_v28  ;;  %v1761_v49 = vpop.permute.xlu1 %1760  ;;  %v1569_v29 = vld [vmem:[%s5099_s17 + $0x38] sm:$0xff] }
 0x2bf   : > { %v1956_v44 = vadd.f32 %v1924_v57, %v1892_v40  ;;  %v1987_v55 = vmul.f32 %v1871_v58, %v1682_v23  ;;  %v1988_v20 = vmul.f32 %v1807_v63, %v1683_v54  ;;  %v1684_v30 = vunpack.c.l.bf16 %v1663_v38 }
 0x2c0   : > { %v1685_v51 = vunpack.c.h.bf16 %v1663_v38  ;;  %v2259_v26 = vmul.f32 %v2143_v36, %v1634_v6  ;;  %v2260_v37 = vmul.f32 %v2207_v22, %v1635_v48  ;;  %v1808_v2 = vsel %vm1802_vm0, %v1759_v15, %v1761_v49  ;;  %v2096_v62 = vpop.permute.xlu0 %2095 }
 0x2c1   : > { %v1872_v21 = vsel %vm1802_vm0, %v1761_v49, %v1759_v15  ;;  %v1894_v33 = vmul.f32 %v1589_v12, %v6286_v8  ;;  %v2230_v41 = vmul.f32 %v1589_v12, %v6287_v59  ;;  %v1925_v25 = vmul.f32 %v1808_v2, %v1636_v0  ;;  %v5782_v49 = vld [vmem:[%s5107_s7 + $0x30] sm:$0xff] }
 0x2c2   : > { %v1926_v63 = vmul.f32 %v1872_v21, %v1637_v42  ;;  %v2019_v58 = vadd.f32 %v1987_v55, %v1955_v19  ;;  %v2020_v4 = vadd.f32 %v1988_v20, %v1956_v44  ;;  %v1638_v27 = vunpack.c.l.bf16 %v5765_v14  ;;  %v2098_v9 = vpop.permute.xlu1 %2097 }
 0x2c3   : > { %v1639_v6 = vunpack.c.h.bf16 %v5765_v14  ;;  %v1957_v18 = vadd.f32 %v1925_v25, %v1893_v17  ;;  %v1989_v39 = vmul.f32 %v1872_v21, %v1684_v30  ;;  %v1990_v34 = vmul.f32 %v1808_v2, %v1685_v51  ;;  %v1617_v2 = vld [vmem:[%s5105_s20 + $0x38] sm:$0xff]  ;;  %v6288_v25 = vld [vmem:[#allocation59_spill] sm:$0xff] }
 0x2c4   : > { %v1958_v48 = vadd.f32 %v1926_v63, %v1894_v33  ;;  %v2291_v57 = vadd.f32 %v2259_v26, %v2227_v24  ;;  %v2292_v52 = vadd.f32 %v2260_v37, %v2228_v7  ;;  %v2144_v12 = vsel %vm1802_vm0, %v2096_v62, %v2098_v9  ;;  %v1763_v17 = vpop.permute.xlu0 %1762 }
 0x2c5   : > { %v2208_v10 = vsel %vm1802_vm0, %v2098_v9, %v2096_v62  ;;  %v2021_v5 = vadd.f32 %v1989_v39, %v1957_v18  ;;  %v2261_v28 = vmul.f32 %v2144_v12, %v1636_v0  ;;  %v2323_v45 = vmul.f32 %v2207_v22, %v1682_v23  ;;  %v6290_v62 = vld [vmem:[#allocation65_spill] sm:$0xff] }
 0x2c6   : > { %v2022_v31 = vadd.f32 %v1990_v34, %v1958_v48  ;;  %v2262_v40 = vmul.f32 %v2208_v10, %v1637_v42  ;;  %v2324_v3 = vmul.f32 %v2143_v36, %v1683_v54  ;;  %v2325_v38 = vmul.f32 %v2208_v10, %v1684_v30  ;;  %v1765_v15 = vpop.permute.xlu1 %1764  ;;  %v6291_v48 = vld [vmem:[#allocation68_spill] sm:$0xff]  ;;  %v1665_v34 = vld [vmem:[%s5107_s7 + $0x38] sm:$0xff]  ;;  %v6292_v10 = vld [vmem:[#allocation71_spill] sm:$0xff] }
 0x2c7   : > { %v2326_v32 = vmul.f32 %v2144_v12, %v1685_v51  ;;  %v3672_v24 = vpack.c.bf16 %v2021_v5, %v2019_v58  ;;  %v2293_v19 = vadd.f32 %v2261_v28, %v2229_v43  ;;  %v1590_v55 = vunpack.c.l.bf16 %v1568_v13  ;;  %v6289_v58 = vld [vmem:[#allocation60_spill] sm:$0xff] }
 0x2c8   : > { %v3792_v7 = vpack.c.bf16 %v2022_v31, %v2020_v4  ;;  %v2294_v44 = vadd.f32 %v2262_v40, %v2230_v41  ;;  %v1591_v20 = vunpack.c.h.bf16 %v1568_v13  ;;  %v1809_v0 = vsel %vm1802_vm0, %v1763_v17, %v1765_v15  ;;  %v2100_v37 = vpop.permute.xlu0 %2099 }
 0x2c9   : > { %v1873_v23 = vsel %vm1802_vm0, %v1765_v15, %v1763_v17  ;;  %v2355_v54 = vadd.f32 %v2323_v45, %v2291_v57  ;;  %v2356_v36 = vadd.f32 %v2324_v3, %v2292_v52  ;;  %3900 = vst [vmem:[%s5681_s28 + $0x10] sm:$0xff] %v3672_v24   ;;  %v2357_v22 = vadd.f32 %v2325_v38, %v2293_v19 }
 0x2ca   : > { %3922 = vst [vmem:[%s5681_s28 + $0x50] sm:$0xff] %v3792_v7   ;;  %v2358_v42 = vadd.f32 %v2326_v32, %v2294_v44  ;;  %v1592_v30 = vunpack.c.l.bf16 %v1569_v29  ;;  %v1593_v43 = vunpack.c.h.bf16 %v1569_v29  ;;  %v1927_v51 = vmul.f32 %v1809_v0, %v1638_v27  ;;  %v2102_v41 = vpop.permute.xlu1 %2101  ;;  %v5807_v29 = vld [vmem:[%s5105_s20 + $0x40] sm:$0xff] }
 0x2cb   : > { %v1928_v26 = vmul.f32 %v1873_v23, %v1639_v6  ;;  %v3712_v21 = vpack.c.bf16 %v2357_v22, %v2355_v54  ;;  %v1686_v33 = vunpack.c.l.bf16 %v5782_v49  ;;  %v1687_v59 = vunpack.c.h.bf16 %v5782_v49 }
 0x2cc   : > { %v3832_v8 = vpack.c.bf16 %v2358_v42, %v2356_v36  ;;  %v1895_v63 = vmul.f32 %v1590_v55, %v6288_v25  ;;  %v1896_v4 = vmul.f32 %v1591_v20, %v6289_v58  ;;  %v2231_v18 = vmul.f32 %v1590_v55, %v6290_v62  ;;  %v1767_v40 = vpop.permute.xlu0 %1766 }
 0x2cd   : > { %v2232_v39 = vmul.f32 %v1591_v20, %v6291_v48  ;;  %3907 = vst [vmem:[%s5714_s19 + $0x10] sm:$0xff] %v3712_v21   ;;  %v2145_v9 = vsel %vm1802_vm0, %v2100_v37, %v2102_v41  ;;  %v2209_v57 = vsel %vm1802_vm0, %v2102_v41, %v2100_v37  ;;  %v1640_v52 = vunpack.c.l.bf16 %v1617_v2 }
 0x2ce   : > { %3930 = vst [vmem:[%s5714_s19 + $0x50] sm:$0xff] %v3832_v8   ;;  %v1641_v12 = vunpack.c.h.bf16 %v1617_v2  ;;  %v1897_v13 = vmul.f32 %v1592_v30, %v6292_v10  ;;  %v2233_v5 = vmul.f32 %v1592_v30, %v5473_v35  ;;  %v1959_v31 = vadd.f32 %v1927_v51, %v1895_v63  ;;  %v1769_v17 = vpop.permute.xlu1 %1768  ;;  %v1570_v51 = vld [vmem:[%s5099_s17 + $0x40] sm:$0xff] }
 0x2cf   : > { %v1960_v28 = vadd.f32 %v1928_v26, %v1896_v4  ;;  %v1991_v45 = vmul.f32 %v1873_v23, %v1686_v33  ;;  %v1992_v3 = vmul.f32 %v1809_v0, %v1687_v59  ;;  %v1688_v38 = vunpack.c.l.bf16 %v1665_v34  ;;  %v1571_v4 = vld [vmem:[%s5099_s17 + $0x48] sm:$0xff] }
 0x2d0   : > { %v1689_v32 = vunpack.c.h.bf16 %v1665_v34  ;;  %v2263_v24 = vmul.f32 %v2145_v9, %v1638_v27  ;;  %v2264_v7 = vmul.f32 %v2209_v57, %v1639_v6  ;;  %v1810_v19 = vsel %vm1802_vm0, %v1767_v40, %v1769_v17  ;;  %v2104_v23 = vpop.permute.xlu0 %2103 }
 0x2d1   : > { %v1874_v35 = vsel %vm1802_vm0, %v1769_v17, %v1767_v40  ;;  %v1898_v44 = vmul.f32 %v1593_v43, %v5447_v1  ;;  %v2234_v15 = vmul.f32 %v1593_v43, %v5477_v53  ;;  %v1929_v55 = vmul.f32 %v1810_v19, %v1640_v52 }
 0x2d2   : > { %v1930_v20 = vmul.f32 %v1874_v35, %v1641_v12  ;;  %v2023_v49 = vadd.f32 %v1991_v45, %v1959_v31  ;;  %v2024_v0 = vadd.f32 %v1992_v3, %v1960_v28  ;;  %v1642_v54 = vunpack.c.l.bf16 %v5807_v29  ;;  %v2106_v42 = vpop.permute.xlu1 %2105  ;;  %v5824_v31 = vld [vmem:[%s5107_s7 + $0x40] sm:$0xff] }
 0x2d3   : > { %v1643_v27 = vunpack.c.h.bf16 %v5807_v29  ;;  %v1961_v14 = vadd.f32 %v1929_v55, %v1897_v13  ;;  %v1993_v36 = vmul.f32 %v1874_v35, %v1688_v38  ;;  %v1994_v22 = vmul.f32 %v1810_v19, %v1689_v32 }
 0x2d4   : > { %v1962_v6 = vadd.f32 %v1930_v20, %v1898_v44  ;;  %v2295_v30 = vadd.f32 %v2263_v24, %v2231_v18  ;;  %v2296_v1 = vadd.f32 %v2264_v7, %v2232_v39  ;;  %v2146_v53 = vsel %vm1802_vm0, %v2104_v23, %v2106_v42  ;;  %v1771_v58 = vpop.permute.xlu0 %1770  ;;  %v1667_v20 = vld [vmem:[%s5107_s7 + $0x48] sm:$0xff] }
 0x2d5   : > { %v2210_v43 = vsel %vm1802_vm0, %v2106_v42, %v2104_v23  ;;  %v2025_v26 = vadd.f32 %v1993_v36, %v1961_v14  ;;  %v2265_v2 = vmul.f32 %v2146_v53, %v1640_v52  ;;  %v2327_v8 = vmul.f32 %v2209_v57, %v1686_v33  ;;  %v6293_v36 = vld [vmem:[#allocation43_spill] sm:$0xff] }
 0x2d6   : > { %v2026_v37 = vadd.f32 %v1994_v22, %v1962_v6  ;;  %v2266_v21 = vmul.f32 %v2210_v43, %v1641_v12  ;;  %v2328_v41 = vmul.f32 %v2145_v9, %v1687_v59  ;;  %v2329_v25 = vmul.f32 %v2210_v43, %v1688_v38  ;;  %v1773_v34 = vpop.permute.xlu1 %1772  ;;  %v1619_v38 = vld [vmem:[%s5105_s20 + $0x48] sm:$0xff]  ;;  %v5849_v43 = vld [vmem:[%s5105_s20 + $0x50] sm:$0xff] }
 0x2d7   : > { %v2330_v63 = vmul.f32 %v2146_v53, %v1689_v32  ;;  %v3677_v62 = vpack.c.bf16 %v2025_v26, %v2023_v49  ;;  %v2297_v48 = vadd.f32 %v2265_v2, %v2233_v5  ;;  %v1594_v10 = vunpack.c.l.bf16 %v1570_v51  ;;  %v6294_v2 = vld [vmem:[#allocation45_spill] sm:$0xff] }
 0x2d8   : > { %v3797_v18 = vpack.c.bf16 %v2026_v37, %v2024_v0  ;;  %v2298_v39 = vadd.f32 %v2266_v21, %v2234_v15  ;;  %v1595_v13 = vunpack.c.h.bf16 %v1570_v51  ;;  %v1811_v52 = vsel %vm1802_vm0, %v1771_v58, %v1773_v34  ;;  %v2108_v3 = vpop.permute.xlu0 %2107 }
 0x2d9   : > { %v1875_v33 = vsel %vm1802_vm0, %v1773_v34, %v1771_v58  ;;  %v2359_v59 = vadd.f32 %v2327_v8, %v2295_v30  ;;  %v2360_v9 = vadd.f32 %v2328_v41, %v2296_v1  ;;  %3901 = vst [vmem:[%s5681_s28 + $0x18] sm:$0xff] %v3677_v62   ;;  %v2361_v57 = vadd.f32 %v2329_v25, %v2297_v48  ;;  %v6295_v8 = vld [vmem:[#allocation46_spill] sm:$0xff] }
 0x2da   : > { %3923 = vst [vmem:[%s5681_s28 + $0x58] sm:$0xff] %v3797_v18   ;;  %v2362_v12 = vadd.f32 %v2330_v63, %v2298_v39  ;;  %v1596_v28 = vunpack.c.l.bf16 %v1571_v4  ;;  %v1597_v5 = vunpack.c.h.bf16 %v1571_v4  ;;  %v1931_v40 = vmul.f32 %v1811_v52, %v1642_v54  ;;  %v2110_v19 = vpop.permute.xlu1 %2109 }
 0x2db   : > { %v1932_v45 = vmul.f32 %v1875_v33, %v1643_v27  ;;  %v3717_v32 = vpack.c.bf16 %v2361_v57, %v2359_v59  ;;  %v1690_v24 = vunpack.c.l.bf16 %v5824_v31  ;;  %v1691_v7 = vunpack.c.h.bf16 %v5824_v31 }
 0x2dc   : > { %v3837_v17 = vpack.c.bf16 %v2362_v12, %v2360_v9  ;;  %v1899_v35 = vmul.f32 %v1594_v10, %v5307_v47  ;;  %v1900_v44 = vmul.f32 %v1595_v13, %v5483_v11  ;;  %v2235_v15 = vmul.f32 %v1594_v10, %v5312_v50  ;;  %v1775_v42 = vpop.permute.xlu0 %1774 }
 0x2dd   : > { %v2236_v55 = vmul.f32 %v1595_v13, %v5315_v56  ;;  %3908 = vst [vmem:[%s5714_s19 + $0x18] sm:$0xff] %v3717_v32   ;;  %v2147_v49 = vsel %vm1802_vm0, %v2108_v3, %v2110_v19  ;;  %v2211_v0 = vsel %vm1802_vm0, %v2110_v19, %v2108_v3  ;;  %v1644_v23 = vunpack.c.l.bf16 %v1619_v38 }
 0x2de   : > { %3931 = vst [vmem:[%s5714_s19 + $0x58] sm:$0xff] %v3837_v17   ;;  %v1645_v14 = vunpack.c.h.bf16 %v1619_v38  ;;  %v1901_v6 = vmul.f32 %v1596_v28, %v5323_v61  ;;  %v2237_v47 = vmul.f32 %v1596_v28, %v6293_v36  ;;  %v1963_v22 = vadd.f32 %v1931_v40, %v1899_v35  ;;  %v1777_v53 = vpop.permute.xlu1 %1776  ;;  %v1573_v38 = vld [vmem:[%s5099_s17 + $0x58] sm:$0xff] }
 0x2df   : > { %v1964_v11 = vadd.f32 %v1932_v45, %v1900_v44  ;;  %v1995_v50 = vmul.f32 %v1875_v33, %v1690_v24  ;;  %v1996_v30 = vmul.f32 %v1811_v52, %v1691_v7  ;;  %v1692_v56 = vunpack.c.l.bf16 %v1667_v20  ;;  %v1572_v33 = vld [vmem:[%s5099_s17 + $0x50] sm:$0xff] }
 0x2e0   : > { %v1693_v1 = vunpack.c.h.bf16 %v1667_v20  ;;  %v2267_v51 = vmul.f32 %v2147_v49, %v1642_v54  ;;  %v2268_v26 = vmul.f32 %v2211_v0, %v1643_v27  ;;  %v1812_v61 = vsel %vm1802_vm0, %v1775_v42, %v1777_v53  ;;  %v2112_v62 = vpop.permute.xlu0 %2111  ;;  %v5866_v20 = vld [vmem:[%s5107_s7 + $0x50] sm:$0xff] }
 0x2e1   : > { %v1876_v37 = vsel %vm1802_vm0, %v1777_v53, %v1775_v42  ;;  %v1902_v21 = vmul.f32 %v1597_v5, %v6294_v2  ;;  %v2238_v41 = vmul.f32 %v1597_v5, %v6295_v8  ;;  %v1933_v25 = vmul.f32 %v1812_v61, %v1644_v23  ;;  %v1621_v42 = vld [vmem:[%s5105_s20 + $0x58] sm:$0xff]  ;;  %v6299_v8 = vld [vmem:[#allocation52_spill] sm:$0xff] }
 0x2e2   : > { %v1934_v63 = vmul.f32 %v1876_v37, %v1645_v14  ;;  %v2027_v58 = vadd.f32 %v1995_v50, %v1963_v22  ;;  %v2028_v4 = vadd.f32 %v1996_v30, %v1964_v11  ;;  %v1646_v18 = vunpack.c.l.bf16 %v5849_v43  ;;  %v2114_v34 = vpop.permute.xlu1 %2113  ;;  %v6298_v2 = vld [vmem:[#allocation49_spill] sm:$0xff] }
 0x2e3   : > { %v1647_v54 = vunpack.c.h.bf16 %v5849_v43  ;;  %v1965_v29 = vadd.f32 %v1933_v25, %v1901_v6  ;;  %v1997_v48 = vmul.f32 %v1876_v37, %v1692_v56  ;;  %v1998_v39 = vmul.f32 %v1812_v61, %v1693_v1  ;;  %v6297_v61 = vld [vmem:[#allocation51_spill] sm:$0xff]  ;;  %v1669_v25 = vld [vmem:[%s5107_s7 + $0x58] sm:$0xff] }
 0x2e4   : > { %v1966_v27 = vadd.f32 %v1934_v63, %v1902_v21  ;;  %v2299_v10 = vadd.f32 %v2267_v51, %v2235_v15  ;;  %v2300_v13 = vadd.f32 %v2268_v26, %v2236_v55  ;;  %v2148_v31 = vsel %vm1802_vm0, %v2112_v62, %v2114_v34  ;;  %v1779_v3 = vpop.permute.xlu0 %1778  ;;  %v6296_v51 = vld [vmem:[#allocation48_spill] sm:$0xff] }
 0x2e5   : > { %v2212_v52 = vsel %vm1802_vm0, %v2114_v34, %v2112_v62  ;;  %v2029_v59 = vadd.f32 %v1997_v48, %v1965_v29  ;;  %v2269_v57 = vmul.f32 %v2148_v31, %v1644_v23  ;;  %v2331_v28 = vmul.f32 %v2211_v0, %v1690_v24  ;;  %v6300_v29 = vld [vmem:[#allocation53_spill] sm:$0xff]  ;;  %v6301_v48 = vld [vmem:[#allocation54_spill] sm:$0xff] }
 0x2e6   : > { %v2030_v9 = vadd.f32 %v1998_v39, %v1966_v27  ;;  %v2270_v12 = vmul.f32 %v2212_v52, %v1645_v14  ;;  %v2332_v5 = vmul.f32 %v2147_v49, %v1691_v7  ;;  %v2333_v40 = vmul.f32 %v2212_v52, %v1692_v56  ;;  %v1781_v44 = vpop.permute.xlu1 %1780 }
 0x2e7   : > { %v2334_v45 = vmul.f32 %v2148_v31, %v1693_v1  ;;  %v3682_v32 = vpack.c.bf16 %v2029_v59, %v2027_v58  ;;  %v2301_v19 = vadd.f32 %v2269_v57, %v2237_v47  ;;  %v1598_v15 = vunpack.c.l.bf16 %v1572_v33  ;;  %v5891_v57 = vld [vmem:[%s5105_s20 + $0x60] sm:$0xff] }
 0x2e8   : > { %v3802_v17 = vpack.c.bf16 %v2030_v9, %v2028_v4  ;;  %v2302_v35 = vadd.f32 %v2270_v12, %v2238_v41  ;;  %v1599_v55 = vunpack.c.h.bf16 %v1572_v33  ;;  %v1813_v23 = vsel %vm1802_vm0, %v1779_v3, %v1781_v44  ;;  %v2116_v11 = vpop.permute.xlu0 %2115 }
 0x2e9   : > { %v1877_v24 = vsel %vm1802_vm0, %v1781_v44, %v1779_v3  ;;  %v2363_v7 = vadd.f32 %v2331_v28, %v2299_v10  ;;  %v2364_v49 = vadd.f32 %v2332_v5, %v2300_v13  ;;  %3902 = vst [vmem:[%s5681_s28 + $0x20] sm:$0xff] %v3682_v32   ;;  %v2365_v0 = vadd.f32 %v2333_v40, %v2301_v19 }
 0x2ea   : > { %3924 = vst [vmem:[%s5681_s28 + $0x60] sm:$0xff] %v3802_v17   ;;  %v2366_v14 = vadd.f32 %v2334_v45, %v2302_v35  ;;  %v1600_v6 = vunpack.c.l.bf16 %v1573_v38  ;;  %v1601_v36 = vunpack.c.h.bf16 %v1573_v38  ;;  %v1935_v47 = vmul.f32 %v1813_v23, %v1646_v18  ;;  %v2118_v53 = vpop.permute.xlu1 %2117  ;;  %v6302_v45 = vld [vmem:[#allocation55_spill] sm:$0xff]  ;;  %v6303_v38 = vld [vmem:[#allocation56_spill] sm:$0xff] }
 0x2eb   : > { %v1936_v22 = vmul.f32 %v1877_v24, %v1647_v54  ;;  %v3722_v50 = vpack.c.bf16 %v2365_v0, %v2363_v7  ;;  %v1694_v56 = vunpack.c.l.bf16 %v5866_v20  ;;  %v1695_v1 = vunpack.c.h.bf16 %v5866_v20 }
 0x2ec   : > { %v3842_v30 = vpack.c.bf16 %v2366_v14, %v2364_v49  ;;  %v1903_v26 = vmul.f32 %v1598_v15, %v6296_v51  ;;  %v1904_v37 = vmul.f32 %v1599_v55, %v6297_v61  ;;  %v2239_v21 = vmul.f32 %v1598_v15, %v6298_v2  ;;  %v1783_v13 = vpop.permute.xlu0 %1782 }
 0x2ed   : > { %v2240_v41 = vmul.f32 %v1599_v55, %v6299_v8  ;;  %3909 = vst [vmem:[%s5714_s19 + $0x20] sm:$0xff] %v3722_v50   ;;  %v2149_v63 = vsel %vm1802_vm0, %v2116_v11, %v2118_v53  ;;  %v2213_v58 = vsel %vm1802_vm0, %v2118_v53, %v2116_v11  ;;  %v1648_v4 = vunpack.c.l.bf16 %v1621_v42 }
 0x2ee   : > { %3932 = vst [vmem:[%s5714_s19 + $0x60] sm:$0xff] %v3842_v30   ;;  %v1649_v62 = vunpack.c.h.bf16 %v1621_v42  ;;  %v1905_v27 = vmul.f32 %v1600_v6, %v6300_v29  ;;  %v2241_v39 = vmul.f32 %v1600_v6, %v6301_v48  ;;  %v1967_v34 = vadd.f32 %v1935_v47, %v1903_v26  ;;  %v1785_v9 = vpop.permute.xlu1 %1784  ;;  %v1574_v6 = vld [vmem:[%s5099_s17 + $0x60] sm:$0xff]  ;;  %v1575_v26 = vld [vmem:[%s5099_s17 + $0x68] sm:$0xff] }
 0x2ef   : > { %v1968_v10 = vadd.f32 %v1936_v22, %v1904_v37  ;;  %v1999_v31 = vmul.f32 %v1877_v24, %v1694_v56  ;;  %v2000_v52 = vmul.f32 %v1813_v23, %v1695_v1  ;;  %v1696_v33 = vunpack.c.l.bf16 %v1669_v25  ;;  %v5908_v29 = vld [vmem:[%s5107_s7 + $0x60] sm:$0xff] }
 0x2f0   : > { %v1697_v59 = vunpack.c.h.bf16 %v1669_v25  ;;  %v2271_v12 = vmul.f32 %v2149_v63, %v1646_v18  ;;  %v2272_v28 = vmul.f32 %v2213_v58, %v1647_v54  ;;  %v1814_v5 = vsel %vm1802_vm0, %v1783_v13, %v1785_v9  ;;  %v2120_v15 = vpop.permute.xlu0 %2119 }
 0x2f1   : > { %v1878_v40 = vsel %vm1802_vm0, %v1785_v9, %v1783_v13  ;;  %v1906_v3 = vmul.f32 %v1601_v36, %v6302_v45  ;;  %v2242_v32 = vmul.f32 %v1601_v36, %v6303_v38  ;;  %v1937_v17 = vmul.f32 %v1814_v5, %v1648_v4  ;;  %v1623_v13 = vld [vmem:[%s5105_s20 + $0x68] sm:$0xff]  ;;  %v6306_v45 = vld [vmem:[#allocation62_spill] sm:$0xff]  ;;  %v6307_v38 = vld [vmem:[#allocation64_spill] sm:$0xff] }
 0x2f2   : > { %v1938_v19 = vmul.f32 %v1878_v40, %v1649_v62  ;;  %v2031_v35 = vadd.f32 %v1999_v31, %v1967_v34  ;;  %v2032_v44 = vadd.f32 %v2000_v52, %v1968_v10  ;;  %v1650_v55 = vunpack.c.l.bf16 %v5891_v57  ;;  %v2122_v24 = vpop.permute.xlu1 %2121 }
 0x2f3   : > { %v1651_v18 = vunpack.c.h.bf16 %v5891_v57  ;;  %v1969_v43 = vadd.f32 %v1937_v17, %v1905_v27  ;;  %v2001_v20 = vmul.f32 %v1878_v40, %v1696_v33  ;;  %v2002_v23 = vmul.f32 %v1814_v5, %v1697_v59  ;;  %v6305_v5 = vld [vmem:[#allocation63_spill] sm:$0xff] }
 0x2f4   : > { %v1970_v54 = vadd.f32 %v1938_v19, %v1906_v3  ;;  %v2303_v7 = vadd.f32 %v2271_v12, %v2239_v21  ;;  %v2304_v49 = vadd.f32 %v2272_v28, %v2240_v41  ;;  %v2150_v0 = vsel %vm1802_vm0, %v2120_v15, %v2122_v24  ;;  %v1787_v51 = vpop.permute.xlu0 %1786  ;;  %v6304_v12 = vld [vmem:[#allocation61_spill] sm:$0xff]  ;;  %v1671_v17 = vld [vmem:[%s5107_s7 + $0x68] sm:$0xff] }
 0x2f5   : > { %v2214_v14 = vsel %vm1802_vm0, %v2122_v24, %v2120_v15  ;;  %v2033_v36 = vadd.f32 %v2001_v20, %v1969_v43  ;;  %v2273_v22 = vmul.f32 %v2150_v0, %v1648_v4  ;;  %v2335_v42 = vmul.f32 %v2213_v58, %v1694_v56  ;;  %v6308_v43 = vld [vmem:[#allocation66_spill] sm:$0xff]  ;;  %v6309_v20 = vld [vmem:[#allocation67_spill] sm:$0xff] }
 0x2f6   : > { %v2034_v47 = vadd.f32 %v2002_v23, %v1970_v54  ;;  %v2274_v11 = vmul.f32 %v2214_v14, %v1649_v62  ;;  %v2336_v50 = vmul.f32 %v2149_v63, %v1695_v1  ;;  %v2337_v30 = vmul.f32 %v2214_v14, %v1696_v33  ;;  %v1789_v8 = vpop.permute.xlu1 %1788 }
 0x2f7   : > { %v2338_v53 = vmul.f32 %v2150_v0, %v1697_v59  ;;  %v3687_v61 = vpack.c.bf16 %v2033_v36, %v2031_v35  ;;  %v2305_v2 = vadd.f32 %v2273_v22, %v2241_v39  ;;  %v1602_v41 = vunpack.c.l.bf16 %v1574_v6  ;;  %v5933_v22 = vld [vmem:[%s5105_s20 + $0x70] sm:$0xff] }
 0x2f8   : > { %v3807_v37 = vpack.c.bf16 %v2034_v47, %v2032_v44  ;;  %v2306_v21 = vadd.f32 %v2274_v11, %v2242_v32  ;;  %v1603_v25 = vunpack.c.h.bf16 %v1574_v6  ;;  %v1815_v4 = vsel %vm1802_vm0, %v1787_v51, %v1789_v8  ;;  %v2124_v10 = vpop.permute.xlu0 %2123 }
 0x2f9   : > { %v1879_v56 = vsel %vm1802_vm0, %v1789_v8, %v1787_v51  ;;  %v2367_v1 = vadd.f32 %v2335_v42, %v2303_v7  ;;  %v2368_v63 = vadd.f32 %v2336_v50, %v2304_v49  ;;  %3903 = vst [vmem:[%s5681_s28 + $0x28] sm:$0xff] %v3687_v61   ;;  %v2369_v58 = vadd.f32 %v2337_v30, %v2305_v2 }
 0x2fa   : > { %3925 = vst [vmem:[%s5681_s28 + $0x68] sm:$0xff] %v3807_v37   ;;  %v2370_v62 = vadd.f32 %v2338_v53, %v2306_v21  ;;  %v1604_v27 = vunpack.c.l.bf16 %v1575_v26  ;;  %v1605_v48 = vunpack.c.h.bf16 %v1575_v26  ;;  %v1939_v39 = vmul.f32 %v1815_v4, %v1650_v55  ;;  %v2126_v9 = vpop.permute.xlu1 %2125  ;;  %v6310_v53 = vld [vmem:[#allocation69_spill] sm:$0xff]  ;;  %v6311_v26 = vld [vmem:[#allocation70_spill] sm:$0xff] }
 0x2fb   : > { %v1940_v34 = vmul.f32 %v1879_v56, %v1651_v18  ;;  %v3727_v31 = vpack.c.bf16 %v2369_v58, %v2367_v1  ;;  %v1698_v33 = vunpack.c.l.bf16 %v5908_v29  ;;  %v1699_v59 = vunpack.c.h.bf16 %v5908_v29 }
 0x2fc   : > { %v3847_v52 = vpack.c.bf16 %v2370_v62, %v2368_v63  ;;  %v1907_v28 = vmul.f32 %v1602_v41, %v6304_v12  ;;  %v1908_v40 = vmul.f32 %v1603_v25, %v6305_v5  ;;  %v2243_v3 = vmul.f32 %v1602_v41, %v6306_v45  ;;  %v1791_v49 = vpop.permute.xlu0 %1790 }
 0x2fd   : > { %v2244_v32 = vmul.f32 %v1603_v25, %v6307_v38  ;;  %3910 = vst [vmem:[%s5714_s19 + $0x28] sm:$0xff] %v3727_v31   ;;  %v2151_v19 = vsel %vm1802_vm0, %v2124_v10, %v2126_v9  ;;  %v2215_v35 = vsel %vm1802_vm0, %v2126_v9, %v2124_v10  ;;  %v1652_v44 = vunpack.c.l.bf16 %v1623_v13 }
 0x2fe   : > { %3933 = vst [vmem:[%s5714_s19 + $0x68] sm:$0xff] %v3847_v52   ;;  %v1653_v15 = vunpack.c.h.bf16 %v1623_v13  ;;  %v1909_v54 = vmul.f32 %v1604_v27, %v6308_v43  ;;  %v2245_v23 = vmul.f32 %v1604_v27, %v6309_v20  ;;  %v1971_v24 = vadd.f32 %v1939_v39, %v1907_v28  ;;  %v1793_v47 = vpop.permute.xlu1 %1792  ;;  %v1576_v27 = vld [vmem:[%s5099_s17 + $0x70] sm:$0xff] }
 0x2ff   : > { %v1972_v7 = vadd.f32 %v1940_v34, %v1908_v40  ;;  %v2003_v0 = vmul.f32 %v1879_v56, %v1698_v33  ;;  %v2004_v14 = vmul.f32 %v1815_v4, %v1699_v59  ;;  %v1700_v6 = vunpack.c.l.bf16 %v1671_v17 }
 0x300   : > { %v1701_v36 = vunpack.c.h.bf16 %v1671_v17  ;;  %v2275_v11 = vmul.f32 %v2151_v19, %v1650_v55  ;;  %v2276_v42 = vmul.f32 %v2215_v35, %v1651_v18  ;;  %v1816_v50 = vsel %vm1802_vm0, %v1791_v49, %v1793_v47  ;;  %v2128_v41 = vpop.permute.xlu0 %2127  ;;  %v5949_v17 = vld [vmem:[%s5107_s7 + $0x70] sm:$0xff] }
 0x301   : > { %v1880_v30 = vsel %vm1802_vm0, %v1793_v47, %v1791_v49  ;;  %v1910_v51 = vmul.f32 %v1605_v48, %v6310_v53  ;;  %v2246_v61 = vmul.f32 %v1605_v48, %v6311_v26  ;;  %v1941_v37 = vmul.f32 %v1816_v50, %v1652_v44  ;;  %v1673_v53 = vld [vmem:[%s5107_s7 + $0x78] sm:$0xff] }
 0x302   : > { %v1942_v2 = vmul.f32 %v1880_v30, %v1653_v15  ;;  %v2035_v21 = vadd.f32 %v2003_v0, %v1971_v24  ;;  %v2036_v8 = vadd.f32 %v2004_v14, %v1972_v7  ;;  %v1654_v25 = vunpack.c.l.bf16 %v5933_v22  ;;  %v2130_v56 = vpop.permute.xlu1 %2129  ;;  %v1625_v24 = vld [vmem:[%s5105_s20 + $0x78] sm:$0xff] }
 0x303   : > { %v1655_v55 = vunpack.c.h.bf16 %v5933_v22  ;;  %v1973_v57 = vadd.f32 %v1941_v37, %v1909_v54  ;;  %v2005_v29 = vmul.f32 %v1880_v30, %v1700_v6  ;;  %v2006_v4 = vmul.f32 %v1816_v50, %v1701_v36 }
 0x304   : > { %v1974_v18 = vadd.f32 %v1942_v2, %v1910_v51  ;;  %v2307_v1 = vadd.f32 %v2275_v11, %v2243_v3  ;;  %v2308_v63 = vadd.f32 %v2276_v42, %v2244_v32  ;;  %v2152_v58 = vsel %vm1802_vm0, %v2128_v41, %v2130_v56  ;;  %v1795_v12 = vpop.permute.xlu0 %1794  ;;  %v6313_v11 = vld [vmem:[#allocation74_spill] sm:$0xff]  ;;  %v6314_v2 = vld [vmem:[#allocation73_spill] sm:$0xff] }
 0x305   : > { %v2216_v62 = vsel %vm1802_vm0, %v2130_v56, %v2128_v41  ;;  %v2037_v48 = vadd.f32 %v2005_v29, %v1973_v57  ;;  %v2277_v34 = vmul.f32 %v2152_v58, %v1652_v44  ;;  %v2339_v13 = vmul.f32 %v2215_v35, %v1698_v33 }
 0x306   : > { %v2038_v39 = vadd.f32 %v2006_v4, %v1974_v18  ;;  %v2278_v10 = vmul.f32 %v2216_v62, %v1653_v15  ;;  %v2340_v31 = vmul.f32 %v2151_v19, %v1699_v59  ;;  %v2341_v52 = vmul.f32 %v2216_v62, %v1700_v6  ;;  %v1797_v3 = vpop.permute.xlu1 %1796  ;;  %v1577_v59 = vld [vmem:[%s5099_s17 + $0x78] sm:$0xff] }
 0x307   : > { %v2342_v9 = vmul.f32 %v2152_v58, %v1701_v36  ;;  %v3692_v28 = vpack.c.bf16 %v2037_v48, %v2035_v21  ;;  %v2309_v40 = vadd.f32 %v2277_v34, %v2245_v23  ;;  %v1606_v38 = vunpack.c.l.bf16 %v1576_v27  ;;  %v6312_v36 = vld [vmem:[#allocation72_spill] sm:$0xff] }
 0x308   : > { %v3812_v5 = vpack.c.bf16 %v2038_v39, %v2036_v8  ;;  %v2310_v45 = vadd.f32 %v2278_v10, %v2246_v61  ;;  %v1607_v32 = vunpack.c.h.bf16 %v1576_v27  ;;  %v1817_v44 = vsel %vm1802_vm0, %v1795_v12, %v1797_v3  ;;  %v2132_v23 = vpop.permute.xlu0 %2131  ;;  %v6315_v8 = vld [vmem:[#allocation75_spill] sm:$0xff] }
 0x309   : > { %v1881_v33 = vsel %vm1802_vm0, %v1797_v3, %v1795_v12  ;;  %v2371_v19 = vadd.f32 %v2339_v13, %v2307_v1  ;;  %v2372_v35 = vadd.f32 %v2340_v31, %v2308_v63  ;;  %3904 = vst [vmem:[%s5681_s28 + $0x30] sm:$0xff] %v3692_v28   ;;  %v2373_v15 = vadd.f32 %v2341_v52, %v2309_v40 }
 0x30a   : > { %3926 = vst [vmem:[%s5681_s28 + $0x70] sm:$0xff] %v3812_v5   ;;  %v2374_v43 = vadd.f32 %v2342_v9, %v2310_v45  ;;  %v1943_v54 = vmul.f32 %v1817_v44, %v1654_v25  ;;  %v1944_v20 = vmul.f32 %v1881_v33, %v1655_v55  ;;  %v1702_v0 = vunpack.c.l.bf16 %v5949_v17  ;;  %v2134_v6 = vpop.permute.xlu1 %2133  ;;  %v6316_v9 = vld [vmem:[#allocation76_spill] sm:$0xff] }
 0x30b   : > { %v3732_v7 = vpack.c.bf16 %v2373_v15, %v2371_v19  ;;  %v1703_v14 = vunpack.c.h.bf16 %v5949_v17  ;;  %v1911_v47 = vmul.f32 %v1606_v38, %v6312_v36  ;;  %v1912_v42 = vmul.f32 %v1607_v32, %v6313_v11 }
 0x30c   : > { %v3852_v49 = vpack.c.bf16 %v2374_v43, %v2372_v35  ;;  %v1608_v50 = vunpack.c.l.bf16 %v1577_v59  ;;  %v1609_v30 = vunpack.c.h.bf16 %v1577_v59  ;;  %v2153_v51 = vsel %vm1802_vm0, %v2132_v23, %v2134_v6  ;;  %v1799_v29 = vpop.permute.xlu0 %1798 }
 0x30d   : > { %3911 = vst [vmem:[%s5714_s19 + $0x30] sm:$0xff] %v3732_v7   ;;  %v2217_v26 = vsel %vm1802_vm0, %v2134_v6, %v2132_v23  ;;  %v1656_v61 = vunpack.c.l.bf16 %v1625_v24  ;;  %v1657_v37 = vunpack.c.h.bf16 %v1625_v24  ;;  %v2247_v21 = vmul.f32 %v1606_v38, %v6314_v2 }
 0x30e   : > { %3934 = vst [vmem:[%s5714_s19 + $0x70] sm:$0xff] %v3852_v49   ;;  %v2248_v41 = vmul.f32 %v1607_v32, %v6315_v8  ;;  %v1975_v57 = vadd.f32 %v1943_v54, %v1911_v47  ;;  %v1976_v18 = vadd.f32 %v1944_v20, %v1912_v42  ;;  %v2007_v4 = vmul.f32 %v1881_v33, %v1702_v0  ;;  %v1801_v58 = vpop.permute.xlu1 %1800 }
 0x30f   : > { %v2008_v56 = vmul.f32 %v1817_v44, %v1703_v14  ;;  %v1704_v1 = vunpack.c.l.bf16 %v1673_v53  ;;  %v1705_v63 = vunpack.c.h.bf16 %v1673_v53  ;;  %v2279_v62 = vmul.f32 %v2153_v51, %v1654_v25 }
 0x310   : > { %v2280_v27 = vmul.f32 %v2217_v26, %v1655_v55  ;;  %v1818_v48 = vsel %vm1802_vm0, %v1799_v29, %v1801_v58  ;;  %v1882_v39 = vsel %vm1802_vm0, %v1801_v58, %v1799_v29  ;;  %v1913_v34 = vmul.f32 %v1608_v50, %v5458_v46  ;;  %v2136_v25 = vpop.permute.xlu0 %2135 }
 0x311   : > { %v1914_v10 = vmul.f32 %v1609_v30, %v5466_v16  ;;  %v1945_v13 = vmul.f32 %v1818_v48, %v1656_v61  ;;  %v1946_v31 = vmul.f32 %v1882_v39, %v1657_v37  ;;  %v2249_v52 = vmul.f32 %v1608_v50, %v5461_v60 }
 0x312   : > { %v2250_v12 = vmul.f32 %v1609_v30, %v6316_v9  ;;  %v2039_v28 = vadd.f32 %v2007_v4, %v1975_v57  ;;  %v2040_v5 = vadd.f32 %v2008_v56, %v1976_v18  ;;  %v2009_v55 = vmul.f32 %v1882_v39, %v1704_v1  ;;  %v2138_v3 = vpop.permute.xlu1 %2137 }
 0x313   : > { %v1977_v40 = vadd.f32 %v1945_v13, %v1913_v34  ;;  %v1978_v22 = vadd.f32 %v1946_v31, %v1914_v10  ;;  %v2010_v45 = vmul.f32 %v1818_v48, %v1705_v63  ;;  %v2311_v38 = vadd.f32 %v2279_v62, %v2247_v21 }
 0x314   : > { %v2312_v32 = vadd.f32 %v2280_v27, %v2248_v41  ;;  %v2154_v46 = vsel %vm1802_vm0, %v2136_v25, %v2138_v3  ;;  %v2218_v16 = vsel %vm1802_vm0, %v2138_v3, %v2136_v25  ;;  %v2343_v59 = vmul.f32 %v2217_v26, %v1702_v0 }
 0x315   : > { %v2041_v17 = vadd.f32 %v2009_v55, %v1977_v40  ;;  %v2042_v60 = vadd.f32 %v2010_v45, %v1978_v22  ;;  %v2281_v44 = vmul.f32 %v2154_v46, %v1656_v61  ;;  %v2282_v33 = vmul.f32 %v2218_v16, %v1657_v37 }
 0x316   : > { %v2344_v19 = vmul.f32 %v2153_v51, %v1703_v14  ;;  %v2345_v35 = vmul.f32 %v2218_v16, %v1704_v1  ;;  %v2346_v15 = vmul.f32 %v2154_v46, %v1705_v63  ;;  %v2375_v24 = vadd.f32 %v2343_v59, %v2311_v38 }
 0x317   : > { %v3697_v43 = vpack.c.bf16 %v2041_v17, %v2039_v28  ;;  %v3817_v54 = vpack.c.bf16 %v2042_v60, %v2040_v5  ;;  %v2313_v20 = vadd.f32 %v2281_v44, %v2249_v52  ;;  %v2314_v23 = vadd.f32 %v2282_v33, %v2250_v12 }
 0x318   : > { %v2376_v7 = vadd.f32 %v2344_v19, %v2312_v32 }
 0x319   : > { %3905 = vst [vmem:[%s5681_s28 + $0x38] sm:$0xff] %v3697_v43   ;;  %3927 = vst [vmem:[%s5681_s28 + $0x78] sm:$0xff] %v3817_v54   ;;  %v2377_v49 = vadd.f32 %v2345_v35, %v2313_v20  ;;  %v2378_v6 = vadd.f32 %v2346_v15, %v2314_v23 }
 0x31b   : > { %v3737_v36 = vpack.c.bf16 %v2377_v49, %v2375_v24  ;;  %v3857_v47 = vpack.c.bf16 %v2378_v6, %v2376_v7 }
 0x31d   : > { %3912 = vst [vmem:[%s5714_s19 + $0x38] sm:$0xff] %v3737_v36   ;;  %3935 = vst [vmem:[%s5714_s19 + $0x78] sm:$0xff] %v3857_v47  }
 0x31e   : > { %s6317_s23 = sld [smem:[#allocation32_spill]]  ;;  %s6318_s26 = sld [smem:[#allocation33_spill]] }
 0x31f   : > { %s6319_s24 = sld [smem:[#allocation41_spill]]  ;;  %s2904_s1 = sshll.u32 %s5681_s28, 4  ;;  %s2905_s1 = int_to_ptr.vmem [resolvable:$true] %s2904_s1 }
 0x320   : > { %s6320_s12 = sld [smem:[#allocation80_spill]]  ;;  %s4635_s20 = smov 1024  }
 0x321   : > { %s4636_s6 = smov 2048   ;;  %s4637_s7 = smov 16  }
 0x322   : > { %s4638_s22 = smov 64   ;;  %s4639_s28 = smov 4  }
 0x324   : > { %s3545_s27 = sshll.u32 %s6317_s23, 4  ;;  %s3546_s18 = sshll.u32 %s6318_s26, 6 }
 0x325   : > { %s2885_s30 = sadd.s32 %s3546_s18, %s3545_s27  ;;  %p6321_p12 = scmp.ne.s32.totalorder %s6319_s24, 0 }
 0x326   : > { %s5996_s9 = sshll.u32 %s2885_s30, 6  ;;  %s4640_s23 = smov [#allocation17]  }
 0x327   : > { %s2887_s17 = scalar_lea.hbm %s6320_s12, %s5996_s9  ;;  %3992 = sst [smem:[#allocation18]] (%p6321_p12), %s4635_s20 }
 0x328   : > { %3993 = sst [smem:[#allocation18 + $0x1]] (%p6321_p12), %s4636_s6  ;;  %s4641_s26 = smov 0  }
 0x329   : > { %3994 = sst [smem:[#allocation18 + $0x2]] (%p6321_p12), %s4637_s7 }
 0x32a   : > { %3995 = sst [smem:[#allocation18 + $0x3]] (%p6321_p12), %s4638_s22 }
 0x32b   : > { %3996 = sst [smem:[#allocation18 + $0x4]] (%p6321_p12), %s4638_s22 }
 0x32c   : > { %3997 = sst [smem:[#allocation18 + $0x5]] (%p6321_p12), %s4639_s28 }
 0x32d   : > { %3998 = dma.general (%p6321_p12), %s2905_s1, 2048, %s2887_s17, %s2863_s21, %s4640_s23, [#allocation18], %s4641_s26, 0  }
 0x32e   : > { %s6322_s30 = sld [smem:[#allocation81_spill]]  ;;  %s2951_s25 = sshll.u32 %s5714_s19, 4  ;;  %s2952_s25 = int_to_ptr.vmem [resolvable:$true] %s2951_s25 }
 0x32f   : > { %s4642_s12 = smov 1024   ;;  %s4643_s21 = smov 2048  }
 0x330   : > { %3999 = sst [smem:[#allocation20]] (%p6321_p12), %s4642_s12  ;;  %s4644_s1 = smov 16  }
 0x331   : > { %4000 = sst [smem:[#allocation20 + $0x1]] (%p6321_p12), %s4643_s21  ;;  %s4645_s17 = smov 64  }
 0x332   : > { %4001 = sst [smem:[#allocation20 + $0x2]] (%p6321_p12), %s4644_s1  ;;  %s4646_s20 = smov 4  }
 0x333   : > { %4002 = sst [smem:[#allocation20 + $0x3]] (%p6321_p12), %s4645_s17  ;;  %s4647_s6 = smov [#allocation19]  }
 0x334   : > { %s2934_s11 = scalar_lea.hbm %s6322_s30, %s5996_s9  ;;  %4003 = sst [smem:[#allocation20 + $0x4]] (%p6321_p12), %s4645_s17 }
 0x335   : > { %4004 = sst [smem:[#allocation20 + $0x5]] (%p6321_p12), %s4646_s20  ;;  %s4648_s19 = smov 0  }
 0x336   : > { %4005 = dma.general (%p6321_p12), %s2952_s25, 2048, %s2934_s11, %s5991_s16, %s4647_s6, [#allocation20], %s4648_s19, 0  }
 0x337   : > { %s6323_s28 = sld [smem:[#allocation82_spill]]  ;;  %s2998_s26 = sshll.u32 %s5540_s8, 4  ;;  %s2999_s26 = int_to_ptr.vmem [resolvable:$true] %s2998_s26 }
 0x338   : > { %s4649_s27 = smov 1024   ;;  %s4650_s18 = smov 2048  }
 0x339   : > { %4006 = sst [smem:[#allocation22]] (%p6321_p12), %s4649_s27  ;;  %s4651_s30 = smov 16  }
 0x33a   : > { %4007 = sst [smem:[#allocation22 + $0x1]] (%p6321_p12), %s4650_s18  ;;  %s4652_s11 = smov 64  }
 0x33b   : > { %4008 = sst [smem:[#allocation22 + $0x2]] (%p6321_p12), %s4651_s30  ;;  %s4653_s25 = smov 4  }
 0x33c   : > { %4009 = sst [smem:[#allocation22 + $0x3]] (%p6321_p12), %s4652_s11  ;;  %s4655_s8 = smov 0  }
 0x33d   : > { %s2981_s23 = scalar_lea.hbm %s6323_s28, %s5996_s9  ;;  %4010 = sst [smem:[#allocation22 + $0x4]] (%p6321_p12), %s4652_s11 }
 0x33e   : > { %4011 = sst [smem:[#allocation22 + $0x5]] (%p6321_p12), %s4653_s25  ;;  %s4654_s9 = smov [#allocation21]  }
 0x33f   : > { %4012 = dma.general (%p6321_p12), %s2999_s26, 2048, %s2981_s23, %s5991_s16, %s4654_s9, [#allocation22], %s4655_s8, 0  }
 0x340 PF: > { %s6324_s12 = sld [smem:[#allocation30_spill]]  ;;  %s6325_s21 = sld [smem:[#allocation37_spill]] }
 0x341   : > { %p4051_p11 = scmp.ge.s32.totalorder %s4622_s15, 2 }
 0x346   : > { %s3026_s1 = sand.u32 1, %s6324_s12   ;;  %p6326_p3 = scmp.ne.s32.totalorder %s6325_s21, 0 }
 0x347   : > { %s3027_s17 = scalar_lea.sflag [#allocation4], %s3026_s1 }
 0x348   : > { %p4037_p9 = pnand %p4051_p11, %p6326_p3 }
 0x34a   : > { %4573 = dma.done.wait (!%p4037_p9), %s3027_s17, 2048  }
 0x34b   : > { %4575 = vsyncadd (!%p4037_p9), %s3027_s17, 4294965248  ;;  %s6327_s20 = sadd.s32 4294967294, %s4622_s15  }
 0x34c   : > { %s3035_s6 = sand.u32 1, %s6327_s20  }
 0x34d   : > { %s3036_s19 = scalar_lea.sflag [#allocation15], %s3035_s6 }
 0x34e   : > { %4577 = dma.done.wait (!%p4037_p9), %s3036_s19, 4096  }
 0x34f   : > { %4579 = vsyncadd (!%p4037_p9), %s3036_s19, 4294963200  ;;  %s35_s15 = sadd.s32 1, %s4622_s15   ;;  %s6328_s27 = sld [smem:[#allocation29_spill]] }
 0x350   : > { %p32_p0 = scmp.ge.s32.totalorder %s35_s15, 6   ;;  %s6329_s16 = sld [smem:[#allocation40_spill]] }
 0x351   : > { %s6330_s30 = sld [smem:[#allocation31_spill]]  ;;  %s6331_s24 = sld [smem:[#allocation39_spill]] }
 0x352   : > { %s6332_s28 = smov %s4590_s29  ;;  %s6334_s9 = smov %s4602_s10 }
 0x353   : > { %s6335_s10 = smov %s4955_s2  ;;  %s6336_s11 = smov %s4614_s13 }
 0x354   : > { %s6337_s12 = smov %s4618_s14  ;;  %s6339_s14 = smov %s6345_s3 }
 0x355   :  { %34 = sbr.rel (!%p32_p0) target bundleno = 23 (0x17), region = 184 }
 0x356   : > { %s6333_s29 = smov %s6329_s16 }
 0x357   : > { %s6338_s13 = smov %s6331_s24 }
 0x35c   :  { %3050 = vsyncpa [#allocation3], 1 }
 0x35d   :  { %3052 = vsyncpa [#allocation3 + $0x1], 1 }
 0x35e   :  { %3053 = vsyncpa [#allocation6], 1 }
 0x35f   :  { %3054 = vsyncpa [#allocation9], 1 }
 0x360   :  { %3056 = vsyncpa [#allocation9 + $0x1], 1 }
 0x361   :  { %3057 = vsyncpa [#allocation12], 1 }
 0x362   :  { %3059 = vsyncpa [#allocation12 + $0x1], 1 }
 0x363   :  { %3060 = vsyncpa [#allocation4], 1 }
 0x364   :  { %3062 = vsyncpa [#allocation4 + $0x1], 1 }
 0x365   :  { %3063 = vsyncpa [#allocation15], 1 }
 0x366   :  { %3065 = vsyncpa [#allocation15 + $0x1], 1 }

</bundles_post_ra>
